<compile_context>
chip_gen: v5e
topology: v5e:2x2
jax: 0.10.0
libtpu: 0.0.40
codegen_flags: <defaults>
</compile_context>

<pallas_src>
import functools

import jax
import jax.numpy as jnp
from jax.experimental import pallas as pl
from jax.experimental.pallas import tpu as pltpu

NUM_CLASSES = 18
FEAT_C = 2048
LANE = 128


def _round_up(x, m):
    return (x + m - 1) // m * m


def _chip_vmem_budget():
    """Per-generation VMEM budgeting.

    Returns (input_pair_budget, vmem_limit_bytes, two_tensorcores).
    v7x-class parts: 64 MiB VMEM per core, 2 TensorCores per chip.
    v5e / v6e: 128 MiB VMEM, single TensorCore.
    """
    vmem_cap = 64 * 1024 * 1024  # conservative default if the query fails
    try:
        info = pltpu.get_tpu_info()
        vmem_cap = int(getattr(info, "vmem_capacity_bytes", vmem_cap))
    except Exception:
        pass
    if vmem_cap <= 64 * 1024 * 1024:
        # Keep the double-buffered input-tile pair <= 40 MiB; leave headroom for
        # the ~1 MiB resident fc weight, bias, output buffers and scratch.
        return 40 << 20, 56 << 20, True
    # 128 MiB parts: bigger tiles amortize the ~0.35us/step grid overhead.
    return 80 << 20, 96 << 20, False


_INPUT_PAIR_BUDGET, _VMEM_LIMIT, _TWO_TENSORCORES = _chip_vmem_budget()


def _gap_fc_kernel(x_ref, w_ref, b_ref, o_ref):
    # x_ref: [TB, HW, C]  backbone features (f32 or bf16), C=2048 lane-dense
    # w_ref: [C, N_PAD]   fc weight^T, pre-scaled by 1/HW, lane-padded
    # b_ref: [1, N_PAD]   fc bias, lane-padded
    # o_ref: [TB, N_PAD]
    tb, hw, c = x_ref.shape
    # Global average pool = sum over HW (1/HW folded into w_ref).  Accumulate in
    # f32 over static, sublane-aligned HW chunks so the widened intermediate is
    # bounded to [TB, 8, C] regardless of input dtype (bf16-safe, v5e-safe).
    pooled = jnp.zeros((tb, c), jnp.float32)
    for s0 in range(0, hw, 8):
        s1 = min(hw, s0 + 8)
        pooled = pooled + jnp.sum(
            x_ref[:, s0:s1, :].astype(jnp.float32), axis=1
        )
    # Linear layer on the MXU: [TB, 2048] x [2048, 128].
    o_ref[...] = (
        jnp.dot(pooled, w_ref[...], preferred_element_type=jnp.float32)
        + b_ref[...]
    )


@functools.partial(jax.jit, static_argnames=("num_classes", "batch_tile"))
def baseline_resnet_head(x_nhwc, fc_w, fc_b, *, num_classes=NUM_CLASSES,
                         batch_tile=None):
    """GAP + FC head.

    x_nhwc: [B, H, W, 2048] backbone features (f32 or bf16).
    fc_w:   [num_classes, 2048], fc_b: [num_classes]  (nn.Linear layout).
    """
    B, H, W, C = x_nhwc.shape
    HW = H * W
    # Layout-preserving reshape only (no HBM transpose): [B, HW, C].
    x = x_nhwc.reshape(B, HW, C)

    # Pad the class dim to one full lane group; fold 1/HW into the weight.
    n_pad = max(LANE, _round_up(num_classes, LANE))
    w_pad = (
        jnp.zeros((C, n_pad), jnp.float32)
        .at[:, :num_classes]
        .set(fc_w.T.astype(jnp.float32) * (1.0 / HW))
    )
    b_pad = jnp.zeros((1, n_pad), jnp.float32).at[0, :num_classes].set(
        fc_b.astype(jnp.float32)
    )

    # Batch-tile sizing against the VMEM budget, using the *padded* in-VMEM
    # footprint of one batch row: lanes round to 128, sublanes to 8/16/32.
    itemsize = x.dtype.itemsize
    sub_mult = 8 * max(1, 4 // itemsize)           # 8 f32, 16 bf16, 32 int8
    per_row_bytes = _round_up(HW, sub_mult) * _round_up(C, LANE) * itemsize
    tb = max(1, min(B, _INPUT_PAIR_BUDGET // (2 * per_row_bytes)))
    if _TWO_TENSORCORES and B > 1:
        # >= 2 grid steps so the "parallel" axis can shard across both v7x TCs.
        tb = min(tb, (B + 1) // 2)
    if batch_tile is not None:                     # manual override / test hook
        tb = max(1, min(B, batch_tile))
    if tb < B:
        # Output block is [tb, n_pad]; keep its sublane dim a multiple of 8
        # (Mosaic block-shape constraint) unless one tile covers the batch.
        tb = (tb // 8) * 8
        if tb == 0:
            tb = min(B, 8)
    grid_b = pl.cdiv(B, tb)

    out_padded = pl.pallas_call(
        _gap_fc_kernel,
        out_shape=jax.ShapeDtypeStruct((B, n_pad), jnp.float32),
        grid=(grid_b,),
        in_specs=[
            # TB batch rows per step, lane-dense [B, HW, C] layout.
            pl.BlockSpec((tb, HW, C), lambda i: (i, 0, 0)),
            # FC weight / bias are grid-invariant (never re-DMAed by Pallas).
            pl.BlockSpec((C, n_pad), lambda i: (0, 0)),
            pl.BlockSpec((1, n_pad), lambda i: (0, 0)),
        ],
        out_specs=pl.BlockSpec((tb, n_pad), lambda i: (i, 0)),
        compiler_params=pltpu.CompilerParams(
            dimension_semantics=("parallel",),
            vmem_limit_bytes=_VMEM_LIMIT,
        ),
    )(x, w_pad, b_pad)

    return out_padded[:, :num_classes]


def _reference_head(x_nhwc, fc_w, fc_b):
    pooled = jnp.mean(x_nhwc.astype(jnp.float32), axis=(1, 2))  # GAP -> view
    return pooled @ fc_w.T.astype(jnp.float32) + fc_b.astype(jnp.float32)


if __name__ == "__main__":
    key = jax.random.PRNGKey(0)
    k_x, k_w, k_b, k_x2 = jax.random.split(key, 4)

    # Small synthetic backbone feature map: batch=2, spatial=4x4, channels=2048.
    B, H, W = 2, 4, 4
    x = jax.random.normal(k_x, (B, H, W, FEAT_C), dtype=jnp.float32)

    # Deterministic fc parameters (nn.Linear(2048, 18) shapes).
    fc_w = jax.random.normal(k_w, (NUM_CLASSES, FEAT_C), dtype=jnp.float32) * 0.02
    fc_b = jax.random.normal(k_b, (NUM_CLASSES,), dtype=jnp.float32) * 0.02

    # 1) Basic f32 case.
    out = jax.block_until_ready(baseline_resnet_head(x, fc_w, fc_b))
    ref = _reference_head(x, fc_w, fc_b)
    assert out.shape == (B, NUM_CLASSES), out.shape
    assert jnp.allclose(out, ref, atol=1e-3, rtol=1e-3), "f32 mismatch vs reference"

    # 2) Non-divisible batch (last grid block partially padded), forced tile.
    B2 = 11
    x2 = jax.random.normal(k_x2, (B2, H, W, FEAT_C), dtype=jnp.float32)
    out2 = jax.block_until_ready(
        baseline_resnet_head(x2, fc_w, fc_b, batch_tile=8)
    )
    ref2 = _reference_head(x2, fc_w, fc_b)
    assert out2.shape == (B2, NUM_CLASSES), out2.shape
    assert jnp.allclose(out2, ref2, atol=1e-3, rtol=1e-3), "ragged-B mismatch"

    # 3) bf16 features through DMA/VMEM, f32 accumulation in-kernel.
    x3 = x.astype(jnp.bfloat16)
    out3 = jax.block_until_ready(baseline_resnet_head(x3, fc_w, fc_b))
    ref3 = _reference_head(x3.astype(jnp.float32), fc_w, fc_b)
    assert jnp.allclose(out3, ref3, atol=2e-2, rtol=2e-2), "bf16 mismatch"

    print("KERNEL_OK")
</pallas_src>

<mosaic_0001>
module attributes {stable_mosaic.version = 11 : i64} {
  func.func @_gap_fc_kernel(%arg0: i32, %arg1: memref<2x16x2048xf32, #tpu.memory_space<vmem>>, %arg2: memref<2048x128xf32, #tpu.memory_space<vmem>>, %arg3: memref<1x128xf32, #tpu.memory_space<vmem>>, %arg4: memref<2x128xf32, #tpu.memory_space<vmem>>) attributes {dimension_semantics = [#tpu.dimension_semantics<parallel>], iteration_bounds = array<i64: 1>, scalar_prefetch = 0 : i64, scratch_operands = 0 : i64, tpu.core_type = #tpu.core_type<tc>, window_params = [{transform_indices = @transform_0, window_bounds = array<i64: 2, 16, 2048>}, {pipeline_mode = #tpu.pipeline_mode<synchronous>, transform_indices = @transform_1, window_bounds = array<i64: 2048, 128>}, {pipeline_mode = #tpu.pipeline_mode<synchronous>, transform_indices = @transform_2, window_bounds = array<i64: 1, 128>}, {transform_indices = @transform_3, window_bounds = array<i64: 2, 128>}]} {
    %cst = arith.constant 0.000000e+00 : f32
    %0 = vector.broadcast %cst : f32 to vector<2x2048xf32>
    %c0 = arith.constant 0 : index
    %c0_0 = arith.constant 0 : index
    %c0_1 = arith.constant 0 : index
    %1 = vector.load %arg1[%c0, %c0_0, %c0_1] : memref<2x16x2048xf32, #tpu.memory_space<vmem>>, vector<2x8x2048xf32>
    %cst_2 = arith.constant dense<0.000000e+00> : vector<2x2048xf32>
    %2 = vector.multi_reduction <add>, %1, %cst_2 [1] : vector<2x8x2048xf32> to vector<2x2048xf32>
    %3 = arith.addf %0, %2 : vector<2x2048xf32>
    %c0_3 = arith.constant 0 : index
    %c8 = arith.constant 8 : index
    %c0_4 = arith.constant 0 : index
    %4 = vector.load %arg1[%c0_3, %c8, %c0_4] : memref<2x16x2048xf32, #tpu.memory_space<vmem>>, vector<2x8x2048xf32>
    %cst_5 = arith.constant dense<0.000000e+00> : vector<2x2048xf32>
    %5 = vector.multi_reduction <add>, %4, %cst_5 [1] : vector<2x8x2048xf32> to vector<2x2048xf32>
    %6 = arith.addf %3, %5 : vector<2x2048xf32>
    %c0_6 = arith.constant 0 : index
    %c0_7 = arith.constant 0 : index
    %7 = vector.load %arg2[%c0_6, %c0_7] : memref<2048x128xf32, #tpu.memory_space<vmem>>, vector<2048x128xf32>
    %cst_8 = arith.constant dense<0.000000e+00> : vector<2x128xf32>
    %8 = tpu.matmul %6, %7, %cst_8 {dimension_numbers = #tpu.dot_dimension_numbers<[1], [0], [0], [1], [0, 0, 1, 1], [], []>} : vector<2x2048xf32>, vector<2048x128xf32>, vector<2x128xf32> -> vector<2x128xf32>
    %c0_9 = arith.constant 0 : index
    %c0_10 = arith.constant 0 : index
    %9 = vector.load %arg3[%c0_9, %c0_10] : memref<1x128xf32, #tpu.memory_space<vmem>>, vector<1x128xf32>
    %10 = vector.broadcast %9 : vector<1x128xf32> to vector<2x128xf32>
    %11 = arith.addf %8, %10 : vector<2x128xf32>
    %c0_11 = arith.constant 0 : index
    %c0_12 = arith.constant 0 : index
    %12 = vector.load %arg4[%c0_11, %c0_12] : memref<2x128xf32, #tpu.memory_space<vmem>>, vector<2x128xf32>
    tpu.vector_store %arg4[%c0_11, %c0_12], %11 {strides = array<i32>} : memref<2x128xf32, #tpu.memory_space<vmem>>, vector<2x128xf32>,
    return
  }
  func.func @transform_0(%arg0: i32) -> (i32, i32, i32) {
    %c0_i32 = arith.constant 0 : i32
    %c0_i32_0 = arith.constant 0 : i32
    %c0_i32_1 = arith.constant 0 : i32
    return %arg0, %c0_i32, %c0_i32_0 : i32, i32, i32
  }
  func.func @transform_1(%arg0: i32) -> (i32, i32) {
    %c0_i32 = arith.constant 0 : i32
    %c0_i32_0 = arith.constant 0 : i32
    %c0_i32_1 = arith.constant 0 : i32
    return %c0_i32, %c0_i32_0 : i32, i32
  }
  func.func @transform_2(%arg0: i32) -> (i32, i32) {
    %c0_i32 = arith.constant 0 : i32
    %c0_i32_0 = arith.constant 0 : i32
    %c0_i32_1 = arith.constant 0 : i32
    return %c0_i32, %c0_i32_0 : i32, i32
  }
  func.func @transform_3(%arg0: i32) -> (i32, i32) {
    %c0_i32 = arith.constant 0 : i32
    %c0_i32_0 = arith.constant 0 : i32
    return %arg0, %c0_i32 : i32, i32
  }
}

</mosaic_0001>

<bundles_post_ra>
// kernel: baseline_resnet_head.1
= control target key start
LH: loop header
LB: loop body
LE: loop exit
PB: predicated region body
PF: predicated region fallthrough
CT: control target
= control target key end

     0   :  { %vm819_vm0 = vcmask 1041409   ;;  %s2220_s0 = inlined_call_operand.vmem [shape: f32[2,16,2048], index: 0, kind: input, shape index: {}]   ;;  %s2221_s1 = inlined_call_operand.vmem [shape: f32[2048,128], index: 1, kind: input, shape index: {}]   ;;  %s2222_s2 = inlined_call_operand.vmem [shape: f32[1,128], index: 2, kind: input, shape index: {}]   ;;  %s2223_s3 = inlined_call_operand.hbm [shape: f32[2,128], index: 3, kind: output, shape index: {}]  }
   0x1   :  { %v542_v0 = vld [vmem:[%s2221_s1 + $0x78] sm:$0xff]  ;;  %v541_v2 = vld [vmem:[%s2221_s1 + $0x70] sm:$0xff]  ;;  %v540_v6 = vld [vmem:[%s2221_s1 + $0x68] sm:$0xff] }
   0x2   :  { %v574_v1 = vld [vmem:[%s2221_s1 + $0x178] sm:$0xff]  ;;  %852 = vmatpush.msra.mxu0 %v542_v0  ;;  %v573_v4 = vld [vmem:[%s2221_s1 + $0x170] sm:$0xff]  ;;  %v572_v8 = vld [vmem:[%s2221_s1 + $0x168] sm:$0xff] }
   0x3   :  { %892 = vmatpush.msra.mxu2 %v574_v1  ;;  %v558_v3 = vld [vmem:[%s2221_s1 + $0xf8] sm:$0xff]  ;;  %v557_v7 = vld [vmem:[%s2221_s1 + $0xf0] sm:$0xff]  ;;  %v556_v10 = vld [vmem:[%s2221_s1 + $0xe8] sm:$0xff] }
   0x4   :  { %v590_v5 = vld [vmem:[%s2221_s1 + $0x1f8] sm:$0xff]  ;;  %872 = vmatpush.msra.mxu1 %v558_v3  ;;  %853 = vmatpush.msra.mxu0 %v541_v2  ;;  %v589_v9 = vld [vmem:[%s2221_s1 + $0x1f0] sm:$0xff]  ;;  %v539_v11 = vld [vmem:[%s2221_s1 + $0x60] sm:$0xff] }
   0x5   :  { %912 = vmatpush.msra.mxu3 %v590_v5  ;;  %893 = vmatpush.msra.mxu2 %v573_v4  ;;  %v571_v12 = vld [vmem:[%s2221_s1 + $0x160] sm:$0xff]  ;;  %v588_v13 = vld [vmem:[%s2221_s1 + $0x1e8] sm:$0xff]  ;;  %v538_v16 = vld [vmem:[%s2221_s1 + $0x58] sm:$0xff] }
   0x6   :  { %873 = vmatpush.msra.mxu1 %v557_v7  ;;  %854 = vmatpush.msra.mxu0 %v540_v6  ;;  %v555_v14 = vld [vmem:[%s2221_s1 + $0xe0] sm:$0xff]  ;;  %v570_v17 = vld [vmem:[%s2221_s1 + $0x158] sm:$0xff]  ;;  %v537_v20 = vld [vmem:[%s2221_s1 + $0x50] sm:$0xff] }
   0x7   :  { %913 = vmatpush.msra.mxu3 %v589_v9  ;;  %894 = vmatpush.msra.mxu2 %v572_v8  ;;  %v587_v15 = vld [vmem:[%s2221_s1 + $0x1e0] sm:$0xff]  ;;  %v554_v18 = vld [vmem:[%s2221_s1 + $0xd8] sm:$0xff]  ;;  %v569_v21 = vld [vmem:[%s2221_s1 + $0x150] sm:$0xff] }
   0x8   :  { %874 = vmatpush.msra.mxu1 %v556_v10  ;;  %855 = vmatpush.msra.mxu0 %v539_v11  ;;  %v586_v19 = vld [vmem:[%s2221_s1 + $0x1d8] sm:$0xff]  ;;  %v553_v22 = vld [vmem:[%s2221_s1 + $0xd0] sm:$0xff]  ;;  %v536_v24 = vld [vmem:[%s2221_s1 + $0x48] sm:$0xff] }
   0x9   :  { %914 = vmatpush.msra.mxu3 %v588_v13  ;;  %895 = vmatpush.msra.mxu2 %v571_v12  ;;  %v585_v23 = vld [vmem:[%s2221_s1 + $0x1d0] sm:$0xff]  ;;  %v568_v25 = vld [vmem:[%s2221_s1 + $0x148] sm:$0xff]  ;;  %v535_v28 = vld [vmem:[%s2221_s1 + $0x40] sm:$0xff] }
   0xa   :  { %875 = vmatpush.msra.mxu1 %v555_v14  ;;  %856 = vmatpush.msra.mxu0 %v538_v16  ;;  %v552_v26 = vld [vmem:[%s2221_s1 + $0xc8] sm:$0xff]  ;;  %v567_v29 = vld [vmem:[%s2221_s1 + $0x140] sm:$0xff]  ;;  %v534_v32 = vld [vmem:[%s2221_s1 + $0x38] sm:$0xff] }
   0xb   :  { %915 = vmatpush.msra.mxu3 %v587_v15  ;;  %896 = vmatpush.msra.mxu2 %v570_v17  ;;  %v584_v27 = vld [vmem:[%s2221_s1 + $0x1c8] sm:$0xff]  ;;  %v551_v30 = vld [vmem:[%s2221_s1 + $0xc0] sm:$0xff]  ;;  %v566_v33 = vld [vmem:[%s2221_s1 + $0x138] sm:$0xff] }
   0xc   :  { %876 = vmatpush.msra.mxu1 %v554_v18  ;;  %857 = vmatpush.msra.mxu0 %v537_v20  ;;  %v583_v31 = vld [vmem:[%s2221_s1 + $0x1c0] sm:$0xff]  ;;  %v550_v34 = vld [vmem:[%s2221_s1 + $0xb8] sm:$0xff]  ;;  %v533_v36 = vld [vmem:[%s2221_s1 + $0x30] sm:$0xff] }
   0xd   :  { %916 = vmatpush.msra.mxu3 %v586_v19  ;;  %897 = vmatpush.msra.mxu2 %v569_v21  ;;  %v582_v35 = vld [vmem:[%s2221_s1 + $0x1b8] sm:$0xff]  ;;  %v565_v37 = vld [vmem:[%s2221_s1 + $0x130] sm:$0xff]  ;;  %v532_v40 = vld [vmem:[%s2221_s1 + $0x28] sm:$0xff] }
   0xe   :  { %877 = vmatpush.msra.mxu1 %v553_v22  ;;  %858 = vmatpush.msra.mxu0 %v536_v24  ;;  %v549_v38 = vld [vmem:[%s2221_s1 + $0xb0] sm:$0xff]  ;;  %v564_v41 = vld [vmem:[%s2221_s1 + $0x128] sm:$0xff]  ;;  %v531_v44 = vld [vmem:[%s2221_s1 + $0x20] sm:$0xff] }
   0xf   :  { %917 = vmatpush.msra.mxu3 %v585_v23  ;;  %898 = vmatpush.msra.mxu2 %v568_v25  ;;  %v581_v39 = vld [vmem:[%s2221_s1 + $0x1b0] sm:$0xff]  ;;  %v548_v42 = vld [vmem:[%s2221_s1 + $0xa8] sm:$0xff]  ;;  %v563_v45 = vld [vmem:[%s2221_s1 + $0x120] sm:$0xff] }
  0x10   :  { %878 = vmatpush.msra.mxu1 %v552_v26  ;;  %859 = vmatpush.msra.mxu0 %v535_v28  ;;  %v580_v43 = vld [vmem:[%s2221_s1 + $0x1a8] sm:$0xff]  ;;  %v547_v46 = vld [vmem:[%s2221_s1 + $0xa0] sm:$0xff]  ;;  %v530_v48 = vld [vmem:[%s2221_s1 + $0x18] sm:$0xff] }
  0x11   :  { %918 = vmatpush.msra.mxu3 %v584_v27  ;;  %899 = vmatpush.msra.mxu2 %v567_v29  ;;  %v579_v47 = vld [vmem:[%s2221_s1 + $0x1a0] sm:$0xff]  ;;  %v562_v49 = vld [vmem:[%s2221_s1 + $0x118] sm:$0xff]  ;;  %v529_v52 = vld [vmem:[%s2221_s1 + $0x10] sm:$0xff] }
  0x12   :  { %879 = vmatpush.msra.mxu1 %v551_v30  ;;  %860 = vmatpush.msra.mxu0 %v534_v32  ;;  %v546_v50 = vld [vmem:[%s2221_s1 + $0x98] sm:$0xff]  ;;  %v561_v53 = vld [vmem:[%s2221_s1 + $0x110] sm:$0xff]  ;;  %v528_v56 = vld [vmem:[%s2221_s1 + $0x8] sm:$0xff] }
  0x13   :  { %919 = vmatpush.msra.mxu3 %v583_v31  ;;  %900 = vmatpush.msra.mxu2 %v566_v33  ;;  %v578_v51 = vld [vmem:[%s2221_s1 + $0x198] sm:$0xff]  ;;  %v545_v54 = vld [vmem:[%s2221_s1 + $0x90] sm:$0xff]  ;;  %v560_v57 = vld [vmem:[%s2221_s1 + $0x108] sm:$0xff] }
  0x14   :  { %880 = vmatpush.msra.mxu1 %v550_v34  ;;  %861 = vmatpush.msra.mxu0 %v533_v36  ;;  %v577_v55 = vld [vmem:[%s2221_s1 + $0x190] sm:$0xff]  ;;  %v544_v58 = vld [vmem:[%s2221_s1 + $0x88] sm:$0xff]  ;;  %v527_v60 = vld [vmem:[%s2221_s1] sm:$0xff] }
  0x15   :  { %920 = vmatpush.msra.mxu3 %v582_v35  ;;  %901 = vmatpush.msra.mxu2 %v565_v37  ;;  %v576_v59 = vld [vmem:[%s2221_s1 + $0x188] sm:$0xff]  ;;  %v559_v61 = vld [vmem:[%s2221_s1 + $0x100] sm:$0xff]  ;;  %v606_v62 = vld [vmem:[%s2221_s1 + $0x278] sm:$0xff] }
  0x16   :  { %881 = vmatpush.msra.mxu1 %v549_v38  ;;  %862 = vmatpush.msra.mxu0 %v532_v40  ;;  %v638_v63 = vld [vmem:[%s2221_s1 + $0x378] sm:$0xff]  ;;  %v543_v0 = vld [vmem:[%s2221_s1 + $0x80] sm:$0xff]  ;;  %v605_v2 = vld [vmem:[%s2221_s1 + $0x270] sm:$0xff] }
  0x17   :  { %921 = vmatpush.msra.mxu3 %v581_v39  ;;  %902 = vmatpush.msra.mxu2 %v564_v41  ;;  %v575_v1 = vld [vmem:[%s2221_s1 + $0x180] sm:$0xff]  ;;  %v622_v3 = vld [vmem:[%s2221_s1 + $0x2f8] sm:$0xff]  ;;  %v637_v4 = vld [vmem:[%s2221_s1 + $0x370] sm:$0xff] }
  0x18   :  { %882 = vmatpush.msra.mxu1 %v548_v42  ;;  %863 = vmatpush.msra.mxu0 %v531_v44  ;;  %v654_v5 = vld [vmem:[%s2221_s1 + $0x3f8] sm:$0xff]  ;;  %v604_v6 = vld [vmem:[%s2221_s1 + $0x268] sm:$0xff]  ;;  %v621_v7 = vld [vmem:[%s2221_s1 + $0x2f0] sm:$0xff] }
  0x19   :  { %922 = vmatpush.msra.mxu3 %v580_v43  ;;  %903 = vmatpush.msra.mxu2 %v563_v45  ;;  %v636_v8 = vld [vmem:[%s2221_s1 + $0x368] sm:$0xff]  ;;  %v653_v9 = vld [vmem:[%s2221_s1 + $0x3f0] sm:$0xff]  ;;  %v603_v10 = vld [vmem:[%s2221_s1 + $0x260] sm:$0xff] }
  0x1a   :  { %883 = vmatpush.msra.mxu1 %v547_v46  ;;  %864 = vmatpush.msra.mxu0 %v530_v48  ;;  %v620_v11 = vld [vmem:[%s2221_s1 + $0x2e8] sm:$0xff]  ;;  %v635_v12 = vld [vmem:[%s2221_s1 + $0x360] sm:$0xff]  ;;  %v602_v14 = vld [vmem:[%s2221_s1 + $0x258] sm:$0xff] }
  0x1b   :  { %923 = vmatpush.msra.mxu3 %v579_v47  ;;  %904 = vmatpush.msra.mxu2 %v562_v49  ;;  %v652_v13 = vld [vmem:[%s2221_s1 + $0x3e8] sm:$0xff]  ;;  %v619_v15 = vld [vmem:[%s2221_s1 + $0x2e0] sm:$0xff]  ;;  %v634_v16 = vld [vmem:[%s2221_s1 + $0x358] sm:$0xff] }
  0x1c   :  { %884 = vmatpush.msra.mxu1 %v546_v50  ;;  %865 = vmatpush.msra.mxu0 %v529_v52  ;;  %v651_v17 = vld [vmem:[%s2221_s1 + $0x3e0] sm:$0xff]  ;;  %v601_v18 = vld [vmem:[%s2221_s1 + $0x250] sm:$0xff]  ;;  %v618_v19 = vld [vmem:[%s2221_s1 + $0x2d8] sm:$0xff] }
  0x1d   :  { %924 = vmatpush.msra.mxu3 %v578_v51  ;;  %905 = vmatpush.msra.mxu2 %v561_v53  ;;  %v633_v20 = vld [vmem:[%s2221_s1 + $0x350] sm:$0xff]  ;;  %v650_v21 = vld [vmem:[%s2221_s1 + $0x3d8] sm:$0xff]  ;;  %v600_v22 = vld [vmem:[%s2221_s1 + $0x248] sm:$0xff] }
  0x1e   :  { %885 = vmatpush.msra.mxu1 %v545_v54  ;;  %866 = vmatpush.msra.mxu0 %v528_v56  ;;  %v617_v23 = vld [vmem:[%s2221_s1 + $0x2d0] sm:$0xff]  ;;  %v632_v24 = vld [vmem:[%s2221_s1 + $0x348] sm:$0xff]  ;;  %v599_v26 = vld [vmem:[%s2221_s1 + $0x240] sm:$0xff] }
  0x1f   :  { %925 = vmatpush.msra.mxu3 %v577_v55  ;;  %906 = vmatpush.msra.mxu2 %v560_v57  ;;  %v649_v25 = vld [vmem:[%s2221_s1 + $0x3d0] sm:$0xff]  ;;  %v616_v27 = vld [vmem:[%s2221_s1 + $0x2c8] sm:$0xff]  ;;  %v631_v28 = vld [vmem:[%s2221_s1 + $0x340] sm:$0xff] }
  0x20   :  { %886 = vmatpush.msra.mxu1 %v544_v58  ;;  %867 = vmatpush.msra.mxu0 %v527_v60  ;;  %v15_v29 = vld [vmem:[%s2220_s0] sm:$0xff]  ;;  %v17_v36 = vld [vmem:[%s2220_s0 + $0x10] sm:$0xff]  ;;  %v648_v38 = vld [vmem:[%s2221_s1 + $0x3c8] sm:$0xff] }
  0x21   :  { %926 = vmatpush.msra.mxu3 %v576_v59  ;;  %907 = vmatpush.msra.mxu2 %v559_v61  ;;  %v31_v30 = vld [vmem:[%s2220_s0 + $0x100] sm:$0xff]  ;;  %v47_v32 = vrot.slane %v15_v29, 4  ;;  %v33_v37 = vld [vmem:[%s2220_s0 + $0x110] sm:$0xff]  ;;  %v59_v40 = vrot.slane %v17_v36, 4  ;;  %v598_v44 = vld [vmem:[%s2221_s1 + $0x238] sm:$0xff] }
  0x22   :  { %932 = vmatpush.msrb.mxu0 %v606_v62  ;;  %887 = vmatpush.msra.mxu1 %v543_v0  ;;  %v271_v31 = vld [vmem:[%s2220_s0 + $0x80] sm:$0xff]  ;;  %v143_v33 = vrot.slane %v31_v30, 4  ;;  %v155_v41 = vrot.slane %v33_v37, 4  ;;  %v273_v42 = vld [vmem:[%s2220_s0 + $0x90] sm:$0xff]  ;;  %v630_v50 = vld [vmem:[%s2221_s1 + $0x338] sm:$0xff] }
  0x23   :  { %972 = vmatpush.msrb.mxu2 %v638_v63  ;;  %927 = vmatpush.msra.mxu3 %v575_v1  ;;  %v287_v34 = vld [vmem:[%s2220_s0 + $0x180] sm:$0xff]  ;;  %v303_v35 = vrot.slane %v271_v31, 4  ;;  %v289_v43 = vld [vmem:[%s2220_s0 + $0x190] sm:$0xff]  ;;  %v48_v46 = vadd.f32 %v47_v32, %v15_v29  ;;  %v315_v49 = vrot.slane %v273_v42, 4  ;;  %v60_v53 = vadd.f32 %v59_v40, %v17_v36  ;;  %v614_v57 = vld [vmem:[%s2221_s1 + $0x2b8] sm:$0xff] }
  0x24   :  { %933 = vmatpush.msrb.mxu0 %v605_v2  ;;  %952 = vmatpush.msrb.mxu1 %v622_v3  ;;  %v399_v39 = vrot.slane %v287_v34, 4  ;;  %v615_v45 = vld [vmem:[%s2221_s1 + $0x2c0] sm:$0xff]  ;;  %v144_v47 = vadd.f32 %v143_v33, %v31_v30  ;;  %v156_v54 = vadd.f32 %v155_v41, %v33_v37  ;;  %v411_v55 = vrot.slane %v289_v43, 4  ;;  %v597_v56 = vld [vmem:[%s2221_s1 + $0x230] sm:$0xff]  ;;  %v646_v63 = vld [vmem:[%s2221_s1 + $0x3b8] sm:$0xff] }
  0x25   :  { %973 = vmatpush.msrb.mxu2 %v637_v4  ;;  %992 = vmatpush.msrb.mxu3 %v654_v5  ;;  %v304_v48 = vadd.f32 %v303_v35, %v271_v31  ;;  %v647_v51 = vld [vmem:[%s2221_s1 + $0x3c0] sm:$0xff]  ;;  %v49_v58 = vrot.slane %v48_v46, 2  ;;  %v316_v61 = vadd.f32 %v315_v49, %v273_v42  ;;  %v629_v62 = vld [vmem:[%s2221_s1 + $0x330] sm:$0xff]  ;;  %v61_v1 = vrot.slane %v60_v53, 2  ;;  %v596_v4 = vld [vmem:[%s2221_s1 + $0x228] sm:$0xff] }
  0x26   :  { %934 = vmatpush.msrb.mxu0 %v604_v6  ;;  %953 = vmatpush.msrb.mxu1 %v621_v7  ;;  %v400_v52 = vadd.f32 %v399_v39, %v287_v34  ;;  %v145_v59 = vrot.slane %v144_v47, 2  ;;  %v157_v2 = vrot.slane %v156_v54, 2  ;;  %v412_v3 = vadd.f32 %v411_v55, %v289_v43  ;;  %v613_v5 = vld [vmem:[%s2221_s1 + $0x2b0] sm:$0xff]  ;;  %v16_v29 = vld [vmem:[%s2220_s0 + $0x8] sm:$0xff]  ;;  %v611_v31 = vld [vmem:[%s2221_s1 + $0x2a0] sm:$0xff] }
  0x27   :  { %974 = vmatpush.msrb.mxu2 %v636_v8  ;;  %993 = vmatpush.msrb.mxu3 %v653_v9  ;;  %v305_v60 = vrot.slane %v304_v48, 2  ;;  %v50_v6 = vadd.f32 %v49_v58, %v48_v46  ;;  %v317_v9 = vrot.slane %v316_v61, 2  ;;  %v32_v30 = vld [vmem:[%s2220_s0 + $0x108] sm:$0xff]  ;;  %v643_v39 = vld [vmem:[%s2221_s1 + $0x3a0] sm:$0xff]  ;;  %v610_v46 = vld [vmem:[%s2221_s1 + $0x298] sm:$0xff]  ;;  %v53_v49 = vrot.slane %v16_v29, 4 }
  0x28   :  { %935 = vmatpush.msrb.mxu0 %v603_v10  ;;  %954 = vmatpush.msrb.mxu1 %v620_v11  ;;  %v401_v0 = vrot.slane %v400_v52, 2  ;;  %v146_v7 = vadd.f32 %v145_v59, %v144_v47  ;;  %v628_v10 = vld [vmem:[%s2221_s1 + $0x328] sm:$0xff]  ;;  %v645_v11 = vld [vmem:[%s2221_s1 + $0x3b0] sm:$0xff] }
  0x29   :  { %975 = vmatpush.msrb.mxu2 %v635_v12  ;;  %994 = vmatpush.msrb.mxu3 %v652_v13  ;;  %v306_v8 = vadd.f32 %v305_v60, %v304_v48  ;;  %v595_v12 = vld [vmem:[%s2221_s1 + $0x220] sm:$0xff]  ;;  %v272_v36 = vld [vmem:[%s2220_s0 + $0x88] sm:$0xff]  ;;  %v609_v59 = vld [vmem:[%s2221_s1 + $0x290] sm:$0xff] }
  0x2a   :  { %936 = vmatpush.msrb.mxu0 %v602_v14  ;;  %955 = vmatpush.msrb.mxu1 %v619_v15  ;;  %v402_v13 = vadd.f32 %v401_v0, %v400_v52  ;;  %v62_v14 = vadd.f32 %v61_v1, %v60_v53  ;;  %v158_v15 = vadd.f32 %v157_v2, %v156_v54  ;;  %v288_v37 = vld [vmem:[%s2220_s0 + $0x188] sm:$0xff]  ;;  %v625_v52 = vld [vmem:[%s2221_s1 + $0x310] sm:$0xff]  ;;  %v642_v53 = vld [vmem:[%s2221_s1 + $0x398] sm:$0xff] }
  0x2b   :  { %976 = vmatpush.msrb.mxu2 %v634_v16  ;;  %995 = vmatpush.msrb.mxu3 %v651_v17  ;;  %v413_v16 = vrot.slane %v412_v3, 2  ;;  %v612_v17 = vld [vmem:[%s2221_s1 + $0x2a8] sm:$0xff]  ;;  %v274_v0 = vld [vmem:[%s2220_s0 + $0x98] sm:$0xff]  ;;  %v641_v2 = vld [vmem:[%s2221_s1 + $0x390] sm:$0xff] }
  0x2c   :  { %937 = vmatpush.msrb.mxu0 %v601_v18  ;;  %956 = vmatpush.msrb.mxu1 %v618_v19  ;;  %v627_v18 = vld [vmem:[%s2221_s1 + $0x320] sm:$0xff]  ;;  %v644_v19 = vld [vmem:[%s2221_s1 + $0x3a8] sm:$0xff] }
  0x2d   :  { %977 = vmatpush.msrb.mxu2 %v633_v20  ;;  %996 = vmatpush.msrb.mxu3 %v650_v21  ;;  %v51_v20 = vrot.slane %v50_v6, 1  ;;  %v147_v21 = vrot.slane %v146_v7, 1  ;;  %v592_v58 = vld [vmem:[%s2221_s1 + $0x208] sm:$0xff] }
  0x2e   :  { %938 = vmatpush.msrb.mxu0 %v600_v22  ;;  %957 = vmatpush.msrb.mxu1 %v617_v23  ;;  %v307_v22 = vrot.slane %v306_v8, 1  ;;  %v318_v23 = vadd.f32 %v317_v9, %v316_v61  ;;  %v54_v61 = vadd.f32 %v53_v49, %v16_v29  ;;  %v624_v1 = vld [vmem:[%s2221_s1 + $0x308] sm:$0xff] }
  0x2f   :  { %978 = vmatpush.msrb.mxu2 %v632_v24  ;;  %997 = vmatpush.msrb.mxu3 %v649_v25  ;;  %v594_v24 = vld [vmem:[%s2221_s1 + $0x218] sm:$0xff]  ;;  %v403_v25 = vrot.slane %v402_v13, 1  ;;  %v52_v32 = vadd.f32 %v51_v20, %v50_v6  ;;  %v148_v33 = vadd.f32 %v147_v21, %v146_v7 }
  0x30   :  { %939 = vmatpush.msrb.mxu0 %v599_v26  ;;  %958 = vmatpush.msrb.mxu1 %v616_v27  ;;  %v63_v26 = vrot.slane %v62_v14, 1  ;;  %v159_v27 = vrot.slane %v158_v15, 1  ;;  %v308_v34 = vadd.f32 %v307_v22, %v306_v8  ;;  %v319_v35 = vrot.slane %v318_v23, 1  ;;  %v608_v8 = vld [vmem:[%s2221_s1 + $0x288] sm:$0xff] }
  0x31   :  { %979 = vmatpush.msrb.mxu2 %v631_v28  ;;  %998 = vmatpush.msrb.mxu3 %v648_v38  ;;  %v414_v28 = vadd.f32 %v413_v16, %v412_v3  ;;  %v626_v38 = vld [vmem:[%s2221_s1 + $0x318] sm:$0xff]  ;;  %v404_v40 = vadd.f32 %v403_v25, %v402_v13  ;;  %v591_v3 = vld [vmem:[%s2221_s1 + $0x200] sm:$0xff]  ;;  %v55_v9 = vrot.slane %v54_v61, 2 }
  0x32   :  { %940 = vmatpush.msrb.mxu0 %v598_v44  ;;  %959 = vmatpush.msrb.mxu1 %v615_v45  ;;  %v64_v41 = vadd.f32 %v63_v26, %v62_v14  ;;  %v160_v42 = vadd.f32 %v159_v27, %v158_v15  ;;  %v18_v44 = vld [vmem:[%s2220_s0 + $0x18] sm:$0xff]  ;;  %v593_v45 = vld [vmem:[%s2221_s1 + $0x210] sm:$0xff]  ;;  %v495_v47 = vadd.f32 %v308_v34, %v52_v32  ;;  %v623_v14 = vld [vmem:[%s2221_s1 + $0x300] sm:$0xff] }
  0x33   :  { %980 = vmatpush.msrb.mxu2 %v630_v50  ;;  %999 = vmatpush.msrb.mxu3 %v647_v51  ;;  %v415_v43 = vrot.slane %v414_v28, 1  ;;  %v320_v48 = vadd.f32 %v319_v35, %v318_v23  ;;  %v149_v50 = vrot.slane %v32_v30, 4  ;;  %v34_v51 = vld [vmem:[%s2220_s0 + $0x118] sm:$0xff]  ;;  %v511_v54 = vadd.f32 %v404_v40, %v148_v33  ;;  %v640_v15 = vld [vmem:[%s2221_s1 + $0x388] sm:$0xff] }
  0x34   :  { %941 = vmatpush.msrb.mxu0 %v597_v56  ;;  %960 = vmatpush.msrb.mxu1 %v614_v57  ;;  %v309_v56 = vrot.slane %v272_v36, 4  ;;  %v405_v57 = vrot.slane %v288_v37, 4  ;;  %v161_v7 = vrot.slane %v34_v51, 4  ;;  %v290_v13 = vld [vmem:[%s2220_s0 + $0x198] sm:$0xff] }
  0x35   :  { %981 = vmatpush.msrb.mxu2 %v629_v62  ;;  %1000 = vmatpush.msrb.mxu3 %v646_v63  ;;  %v416_v55 = vadd.f32 %v415_v43, %v414_v28  ;;  %v497_v60 = vadd.f32 %v320_v48, %v64_v41  ;;  %v150_v62 = vadd.f32 %v149_v50, %v32_v30  ;;  %v65_v63 = vrot.slane %v18_v44, 4 }
  0x36   :  { %942 = vmatpush.msrb.mxu0 %v596_v4  ;;  %961 = vmatpush.msrb.mxu1 %v613_v5  ;;  %v820_v4 = vsel %vm819_vm0, %v511_v54, %v495_v47  ;;  %v310_v6 = vadd.f32 %v309_v56, %v272_v36 }
  0x37   :  { %982 = vmatpush.msrb.mxu2 %v628_v10  ;;  %1001 = vmatpush.msrb.mxu3 %v645_v11  ;;  %v513_v5 = vadd.f32 %v416_v55, %v160_v42  ;;  %v151_v10 = vrot.slane %v150_v62, 2  ;;  %v406_v11 = vadd.f32 %v405_v57, %v288_v37 }
  0x38   :  { %943 = vmatpush.msrb.mxu0 %v595_v12  ;;  %962 = vmatpush.msrb.mxu1 %v612_v17  ;;  %v66_v12 = vadd.f32 %v65_v63, %v18_v44  ;;  %v311_v17 = vrot.slane %v310_v6, 2 }
  0x39   :  { %983 = vmatpush.msrb.mxu2 %v627_v18  ;;  %1002 = vmatpush.msrb.mxu3 %v644_v19  ;;  %v822_v16 = vsel %vm819_vm0, %v513_v5, %v497_v60  ;;  %v162_v18 = vadd.f32 %v161_v7, %v34_v51  ;;  %v321_v19 = vrot.slane %v274_v0, 4 }
  0x3a   :  { %944 = vmatpush.msrb.mxu0 %v594_v24  ;;  %963 = vmatpush.msrb.mxu1 %v611_v31 }
  0x3b   :  { %984 = vmatpush.msrb.mxu2 %v626_v38  ;;  %1003 = vmatpush.msrb.mxu3 %v643_v39 }
  0x3c   :  { %945 = vmatpush.msrb.mxu0 %v593_v45  ;;  %964 = vmatpush.msrb.mxu1 %v610_v46 }
  0x3d   :  { %985 = vmatpush.msrb.mxu2 %v625_v52  ;;  %1004 = vmatpush.msrb.mxu3 %v642_v53 }
  0x3e   :  { %946 = vmatpush.msrb.mxu0 %v592_v58  ;;  %965 = vmatpush.msrb.mxu1 %v609_v59 }
  0x3f   :  { %8 = vsyncpa [#allocation3], 0  ;;  %986 = vmatpush.msrb.mxu2 %v624_v1  ;;  %1005 = vmatpush.msrb.mxu3 %v641_v2  ;;  %v56_v20 = vadd.f32 %v55_v9, %v54_v61  ;;  %v152_v21 = vadd.f32 %v151_v10, %v150_v62  ;;  %v407_v22 = vrot.slane %v406_v11, 2  ;;  %v67_v23 = vrot.slane %v66_v12, 2  ;;  %v670_v24 = vld [vmem:[%s2221_s1 + $0x478] sm:$0xff]  ;;  %v607_v30 = vld [vmem:[%s2221_s1 + $0x280] sm:$0xff] }
  0x40   :  { %947 = vmatpush.msrb.mxu0 %v591_v3  ;;  %966 = vmatpush.msrb.mxu1 %v608_v8  ;;  %v702_v25 = vld [vmem:[%s2221_s1 + $0x578] sm:$0xff]  ;;  %v312_v26 = vadd.f32 %v311_v17, %v310_v6  ;;  %v163_v27 = vrot.slane %v162_v18, 2  ;;  %v322_v28 = vadd.f32 %v321_v19, %v274_v0  ;;  %v417_v29 = vrot.slane %v290_v13, 4  ;;  %v639_v31 = vld [vmem:[%s2221_s1 + $0x380] sm:$0xff]  ;;  %v669_v36 = vld [vmem:[%s2221_s1 + $0x470] sm:$0xff]  ;;  %s1180_s7 = sshll.u32 %s2223_s3, 4  ;;  %s1181_s7 = int_to_ptr.hbm [resolvable:$true] %s1180_s7 }
  0x41   :  { %987 = vmatpush.msrb.mxu2 %v623_v14  ;;  %1006 = vmatpush.msrb.mxu3 %v640_v15  ;;  %v57_v32 = vrot.slane %v56_v20, 1  ;;  %v153_v33 = vrot.slane %v152_v21, 1  ;;  %v408_v34 = vadd.f32 %v407_v22, %v406_v11  ;;  %v68_v35 = vadd.f32 %v67_v23, %v66_v12  ;;  %v701_v41 = vld [vmem:[%s2221_s1 + $0x570] sm:$0xff]  ;;  %v668_v52 = vld [vmem:[%s2221_s1 + $0x468] sm:$0xff]  ;;  %v19_v60 = vld [vmem:[%s2220_s0 + $0x20] sm:$0xff] }
  0x42   :  { %868 = vmatmul.f32.vlgmr.msra.gmra.mxu0 %v820_v4  ;;  %908 = vmatmul.f32.vlgmr.msra.gmra.mxu2 %v822_v16  ;;  %v313_v37 = vrot.slane %v312_v26, 1  ;;  %v164_v38 = vadd.f32 %v163_v27, %v162_v18  ;;  %v323_v39 = vrot.slane %v322_v28, 2  ;;  %v418_v40 = vadd.f32 %v417_v29, %v290_v13  ;;  %v21_v42 = vld [vmem:[%s2220_s0 + $0x30] sm:$0xff]  ;;  %v700_v53 = vld [vmem:[%s2221_s1 + $0x568] sm:$0xff]  ;;  %v667_v1 = vld [vmem:[%s2221_s1 + $0x460] sm:$0xff] }
  0x43   :  { %v37_v43 = vld [vmem:[%s2220_s0 + $0x130] sm:$0xff]  ;;  %1012 = vmatpush.msra.mxu0 %v670_v24  ;;  %1052 = vmatpush.msra.mxu2 %v702_v25  ;;  %v58_v44 = vadd.f32 %v57_v32, %v56_v20  ;;  %v154_v45 = vadd.f32 %v153_v33, %v152_v21  ;;  %v409_v46 = vrot.slane %v408_v34, 1  ;;  %v69_v47 = vrot.slane %v68_v35, 1  ;;  %v699_v2 = vld [vmem:[%s2221_s1 + $0x560] sm:$0xff]  ;;  %v686_v9 = vld [vmem:[%s2221_s1 + $0x4f8] sm:$0xff] }
  0x44   :  { %967 = vmatpush.msrb.mxu1 %v607_v30  ;;  %1007 = vmatpush.msrb.mxu3 %v639_v31  ;;  %v314_v48 = vadd.f32 %v313_v37, %v312_v26  ;;  %v165_v49 = vrot.slane %v164_v38, 1  ;;  %v324_v50 = vadd.f32 %v323_v39, %v322_v28  ;;  %v419_v51 = vrot.slane %v418_v40, 2  ;;  %v277_v54 = vld [vmem:[%s2220_s0 + $0xb0] sm:$0xff]  ;;  %v666_v11 = vld [vmem:[%s2221_s1 + $0x458] sm:$0xff]  ;;  %v35_v12 = vld [vmem:[%s2220_s0 + $0x120] sm:$0xff] }
  0x45   :  { %v410_v55 = vadd.f32 %v409_v46, %v408_v34  ;;  %v70_v56 = vadd.f32 %v69_v47, %v68_v35  ;;  %1013 = vmatpush.msra.mxu0 %v669_v36  ;;  %1053 = vmatpush.msra.mxu2 %v701_v41  ;;  %v83_v57 = vrot.slane %v21_v42, 4  ;;  %v179_v58 = vrot.slane %v37_v43, 4  ;;  %v293_v59 = vld [vmem:[%s2220_s0 + $0x1b0] sm:$0xff]  ;;  %v698_v18 = vld [vmem:[%s2221_s1 + $0x558] sm:$0xff]  ;;  %v275_v19 = vld [vmem:[%s2220_s0 + $0xa0] sm:$0xff] }
  0x46   :  { %v496_v61 = vadd.f32 %v314_v48, %v58_v44  ;;  %v166_v62 = vadd.f32 %v165_v49, %v164_v38  ;;  %v325_v63 = vrot.slane %v324_v50, 1  ;;  %v420_v0 = vadd.f32 %v419_v51, %v418_v40  ;;  %v685_v22 = vld [vmem:[%s2221_s1 + $0x4f0] sm:$0xff]  ;;  %v718_v32 = vld [vmem:[%s2221_s1 + $0x5f8] sm:$0xff]  ;;  %v684_v33 = vld [vmem:[%s2221_s1 + $0x4e8] sm:$0xff] }
  0x47   :  { %v512_v3 = vadd.f32 %v410_v55, %v154_v45  ;;  %1014 = vmatpush.msra.mxu0 %v668_v52  ;;  %1054 = vmatpush.msra.mxu2 %v700_v53  ;;  %v84_v4 = vadd.f32 %v83_v57, %v21_v42  ;;  %v180_v5 = vadd.f32 %v179_v58, %v37_v43  ;;  %v339_v6 = vrot.slane %v277_v54, 4  ;;  %v665_v25 = vld [vmem:[%s2221_s1 + $0x450] sm:$0xff]  ;;  %v683_v40 = vld [vmem:[%s2221_s1 + $0x4e0] sm:$0xff]  ;;  %v664_v43 = vld [vmem:[%s2221_s1 + $0x448] sm:$0xff] }
  0x48   :  { %v326_v7 = vadd.f32 %v325_v63, %v324_v50  ;;  %v421_v8 = vrot.slane %v420_v0, 1  ;;  %v435_v10 = vrot.slane %v293_v59, 4  ;;  %v71_v13 = vrot.slane %v19_v60, 4  ;;  %v697_v30 = vld [vmem:[%s2221_s1 + $0x550] sm:$0xff]  ;;  %v291_v42 = vld [vmem:[%s2220_s0 + $0x1a0] sm:$0xff]  ;;  %v22_v48 = vld [vmem:[%s2220_s0 + $0x38] sm:$0xff] }
  0x49   :  { %v821_v14 = vsel %vm819_vm0, %v512_v3, %v496_v61  ;;  %1015 = vmatpush.msra.mxu0 %v667_v1  ;;  %1055 = vmatpush.msra.mxu2 %v699_v2  ;;  %v85_v15 = vrot.slane %v84_v4, 2  ;;  %v181_v16 = vrot.slane %v180_v5, 2  ;;  %v340_v17 = vadd.f32 %v339_v6, %v277_v54  ;;  %v38_v49 = vld [vmem:[%s2220_s0 + $0x138] sm:$0xff]  ;;  %v696_v50 = vld [vmem:[%s2221_s1 + $0x548] sm:$0xff]  ;;  %v717_v51 = vld [vmem:[%s2221_s1 + $0x5f0] sm:$0xff] }
  0x4a   :  { %888 = vmatmul.f32.vlgmr.msra.gmra.mxu1 %v821_v14  ;;  %v422_v20 = vadd.f32 %v421_v8, %v420_v0  ;;  %v498_v21 = vadd.f32 %v326_v7, %v70_v56  ;;  %v436_v23 = vadd.f32 %v435_v10, %v293_v59  ;;  %v72_v24 = vadd.f32 %v71_v13, %v19_v60  ;;  %v682_v60 = vld [vmem:[%s2221_s1 + $0x4d8] sm:$0xff]  ;;  %v663_v61 = vld [vmem:[%s2221_s1 + $0x440] sm:$0xff]  ;;  %v681_v10 = vld [vmem:[%s2221_s1 + $0x4d0] sm:$0xff] }
  0x4b   :  { %1032 = vmatpush.msra.mxu1 %v686_v9  ;;  %v86_v26 = vadd.f32 %v85_v15, %v84_v4  ;;  %v182_v27 = vadd.f32 %v181_v16, %v180_v5  ;;  %v341_v28 = vrot.slane %v340_v17, 2  ;;  %1016 = vmatpush.msra.mxu0 %v666_v11  ;;  %v167_v29 = vrot.slane %v35_v12, 4  ;;  %v278_v3 = vld [vmem:[%s2220_s0 + $0xb8] sm:$0xff]  ;;  %v695_v4 = vld [vmem:[%s2221_s1 + $0x540] sm:$0xff] }
  0x4c   :  { %v514_v31 = vadd.f32 %v422_v20, %v166_v62  ;;  %v437_v34 = vrot.slane %v436_v23, 2  ;;  %1056 = vmatpush.msra.mxu2 %v698_v18  ;;  %v73_v35 = vrot.slane %v72_v24, 2  ;;  %v327_v36 = vrot.slane %v275_v19, 4  ;;  %v716_v62 = vld [vmem:[%s2221_s1 + $0x5e8] sm:$0xff]  ;;  %v294_v9 = vld [vmem:[%s2220_s0 + $0x1b8] sm:$0xff]  ;;  %v715_v13 = vld [vmem:[%s2221_s1 + $0x5e0] sm:$0xff] }
  0x4d   :  { %1033 = vmatpush.msra.mxu1 %v685_v22  ;;  %v87_v37 = vrot.slane %v86_v26, 1  ;;  %v183_v38 = vrot.slane %v182_v27, 1  ;;  %v342_v39 = vadd.f32 %v341_v28, %v340_v17  ;;  %v168_v41 = vadd.f32 %v167_v29, %v35_v12  ;;  %1017 = vmatpush.msra.mxu0 %v665_v25  ;;  %v662_v11 = vld [vmem:[%s2221_s1 + $0x438] sm:$0xff]  ;;  %v680_v22 = vld [vmem:[%s2221_s1 + $0x4c8] sm:$0xff] }
  0x4e   :  { %v823_v44 = vsel %vm819_vm0, %v514_v31, %v498_v21  ;;  %v438_v45 = vadd.f32 %v437_v34, %v436_v23  ;;  %v74_v46 = vadd.f32 %v73_v35, %v72_v24  ;;  %v328_v47 = vadd.f32 %v327_v36, %v275_v19  ;;  %1057 = vmatpush.msra.mxu2 %v697_v30  ;;  %v20_v21 = vld [vmem:[%s2220_s0 + $0x28] sm:$0xff]  ;;  %v694_v29 = vld [vmem:[%s2221_s1 + $0x538] sm:$0xff]  ;;  %v679_v34 = vld [vmem:[%s2221_s1 + $0x4c0] sm:$0xff] }
  0x4f   :  { %928 = vmatmul.f32.vlgmr.msra.gmra.mxu3 %v823_v44  ;;  %1034 = vmatpush.msra.mxu1 %v684_v33  ;;  %v88_v52 = vadd.f32 %v87_v37, %v86_v26  ;;  %v184_v53 = vadd.f32 %v183_v38, %v182_v27  ;;  %v343_v54 = vrot.slane %v342_v39, 1  ;;  %v169_v55 = vrot.slane %v168_v41, 2  ;;  %v714_v27 = vld [vmem:[%s2221_s1 + $0x5d8] sm:$0xff]  ;;  %v36_v28 = vld [vmem:[%s2220_s0 + $0x128] sm:$0xff]  ;;  %v661_v35 = vld [vmem:[%s2221_s1 + $0x430] sm:$0xff] }
  0x50   :  { %1072 = vmatpush.msra.mxu3 %v718_v32  ;;  %v439_v56 = vrot.slane %v438_v45, 1  ;;  %v75_v57 = vrot.slane %v74_v46, 1  ;;  %v329_v58 = vrot.slane %v328_v47, 2  ;;  %v423_v59 = vrot.slane %v291_v42, 4  ;;  %1018 = vmatpush.msra.mxu0 %v664_v43 }
  0x51   :  { %v344_v63 = vadd.f32 %v343_v54, %v342_v39  ;;  %1035 = vmatpush.msra.mxu1 %v683_v40  ;;  %v170_v0 = vadd.f32 %v169_v55, %v168_v41  ;;  %v89_v1 = vrot.slane %v22_v48, 4  ;;  %v185_v2 = vrot.slane %v38_v49, 4  ;;  %1058 = vmatpush.msra.mxu2 %v696_v50  ;;  %v276_v40 = vld [vmem:[%s2220_s0 + $0xa8] sm:$0xff]  ;;  %v713_v41 = vld [vmem:[%s2221_s1 + $0x5d0] sm:$0xff] }
  0x52   :  { %1073 = vmatpush.msra.mxu3 %v717_v51  ;;  %v440_v5 = vadd.f32 %v439_v56, %v438_v45  ;;  %v76_v6 = vadd.f32 %v75_v57, %v74_v46  ;;  %v330_v7 = vadd.f32 %v329_v58, %v328_v47  ;;  %v424_v8 = vadd.f32 %v423_v59, %v291_v42  ;;  %v693_v42 = vld [vmem:[%s2221_s1 + $0x530] sm:$0xff]  ;;  %v678_v47 = vld [vmem:[%s2221_s1 + $0x4b8] sm:$0xff]  ;;  %v712_v54 = vld [vmem:[%s2221_s1 + $0x5c8] sm:$0xff] }
  0x53   :  { %v501_v12 = vadd.f32 %v344_v63, %v88_v52  ;;  %v171_v14 = vrot.slane %v170_v0, 1  ;;  %v90_v15 = vadd.f32 %v89_v1, %v22_v48  ;;  %v186_v16 = vadd.f32 %v185_v2, %v38_v49  ;;  %1036 = vmatpush.msra.mxu1 %v682_v60  ;;  %1019 = vmatpush.msra.mxu0 %v663_v61  ;;  %v660_v48 = vld [vmem:[%s2221_s1 + $0x428] sm:$0xff]  ;;  %v677_v60 = vld [vmem:[%s2221_s1 + $0x4b0] sm:$0xff]  ;;  %v659_v61 = vld [vmem:[%s2221_s1 + $0x420] sm:$0xff] }
  0x54   :  { %1074 = vmatpush.msra.mxu3 %v716_v62  ;;  %v517_v17 = vadd.f32 %v440_v5, %v184_v53  ;;  %v331_v18 = vrot.slane %v330_v7, 1  ;;  %v425_v19 = vrot.slane %v424_v8, 2  ;;  %v345_v20 = vrot.slane %v278_v3, 4  ;;  %1059 = vmatpush.msra.mxu2 %v695_v4  ;;  %v292_v53 = vld [vmem:[%s2220_s0 + $0x1a8] sm:$0xff]  ;;  %v23_v62 = vld [vmem:[%s2220_s0 + $0x40] sm:$0xff] }
  0x55   :  { %v172_v23 = vadd.f32 %v171_v14, %v170_v0  ;;  %v91_v24 = vrot.slane %v90_v15, 2  ;;  %v187_v25 = vrot.slane %v186_v16, 2  ;;  %v441_v26 = vrot.slane %v294_v9, 4  ;;  %1037 = vmatpush.msra.mxu1 %v681_v10  ;;  %1020 = vmatpush.msra.mxu0 %v662_v11  ;;  %v692_v55 = vld [vmem:[%s2221_s1 + $0x528] sm:$0xff]  ;;  %v691_v4 = vld [vmem:[%s2221_s1 + $0x520] sm:$0xff]  ;;  %v658_v14 = vld [vmem:[%s2221_s1 + $0x418] sm:$0xff] }
  0x56   :  { %v826_v30 = vsel %vm819_vm0, %v517_v17, %v501_v12  ;;  %1075 = vmatpush.msra.mxu3 %v715_v13  ;;  %v332_v31 = vadd.f32 %v331_v18, %v330_v7  ;;  %v426_v32 = vadd.f32 %v425_v19, %v424_v8  ;;  %v346_v33 = vadd.f32 %v345_v20, %v278_v3  ;;  %v711_v3 = vld [vmem:[%s2221_s1 + $0x5c0] sm:$0xff]  ;;  %v710_v13 = vld [vmem:[%s2221_s1 + $0x5b8] sm:$0xff] }
  0x57   :  { %988 = vmatmul.f32.vlgmr.msrb.gmra.mxu2 %v826_v30  ;;  %v92_v36 = vadd.f32 %v91_v24, %v90_v15  ;;  %v188_v37 = vadd.f32 %v187_v25, %v186_v16  ;;  %v442_v38 = vadd.f32 %v441_v26, %v294_v9  ;;  %v77_v39 = vrot.slane %v20_v21, 4  ;;  %1038 = vmatpush.msra.mxu1 %v680_v22  ;;  %v676_v9 = vld [vmem:[%s2221_s1 + $0x4a8] sm:$0xff]  ;;  %v39_v15 = vld [vmem:[%s2220_s0 + $0x140] sm:$0xff]  ;;  %v690_v22 = vld [vmem:[%s2221_s1 + $0x518] sm:$0xff] }
  0x58   :  { %v427_v43 = vrot.slane %v426_v32, 1  ;;  %v499_v44 = vadd.f32 %v332_v31, %v76_v6  ;;  %v347_v45 = vrot.slane %v346_v33, 2  ;;  %1076 = vmatpush.msra.mxu3 %v714_v27  ;;  %v173_v46 = vrot.slane %v36_v28, 4  ;;  %1060 = vmatpush.msra.mxu2 %v694_v29  ;;  %v709_v26 = vld [vmem:[%s2221_s1 + $0x5b0] sm:$0xff]  ;;  %v279_v29 = vld [vmem:[%s2220_s0 + $0xc0] sm:$0xff] }
  0x59   :  { %v93_v49 = vrot.slane %v92_v36, 1  ;;  %v189_v50 = vrot.slane %v188_v37, 1  ;;  %v443_v51 = vrot.slane %v442_v38, 2  ;;  %v78_v52 = vadd.f32 %v77_v39, %v20_v21  ;;  %1039 = vmatpush.msra.mxu1 %v679_v34  ;;  %1021 = vmatpush.msra.mxu0 %v661_v35  ;;  %v675_v21 = vld [vmem:[%s2221_s1 + $0x4a0] sm:$0xff]  ;;  %v657_v27 = vld [vmem:[%s2221_s1 + $0x410] sm:$0xff] }
  0x5a   :  { %v428_v56 = vadd.f32 %v427_v43, %v426_v32  ;;  %v348_v57 = vadd.f32 %v347_v45, %v346_v33  ;;  %v174_v58 = vadd.f32 %v173_v46, %v36_v28  ;;  %v333_v59 = vrot.slane %v276_v40, 4  ;;  %1077 = vmatpush.msra.mxu3 %v713_v41  ;;  %1061 = vmatpush.msra.mxu2 %v693_v42  ;;  %v674_v33 = vld [vmem:[%s2221_s1 + $0x498] sm:$0xff]  ;;  %v689_v34 = vld [vmem:[%s2221_s1 + $0x510] sm:$0xff]  ;;  %v708_v45 = vld [vmem:[%s2221_s1 + $0x5a8] sm:$0xff] }
  0x5b   :  { %v94_v63 = vadd.f32 %v93_v49, %v92_v36  ;;  %v190_v0 = vadd.f32 %v189_v50, %v188_v37  ;;  %v444_v1 = vadd.f32 %v443_v51, %v442_v38  ;;  %v79_v2 = vrot.slane %v78_v52, 2  ;;  %1040 = vmatpush.msra.mxu1 %v678_v47  ;;  %1022 = vmatpush.msra.mxu0 %v660_v48  ;;  %v295_v36 = vld [vmem:[%s2220_s0 + $0x1c0] sm:$0xff]  ;;  %v25_v42 = vld [vmem:[%s2220_s0 + $0x50] sm:$0xff] }
  0x5c   :  { %v515_v5 = vadd.f32 %v428_v56, %v172_v23  ;;  %v349_v6 = vrot.slane %v348_v57, 1  ;;  %v175_v7 = vrot.slane %v174_v58, 2  ;;  %v334_v8 = vadd.f32 %v333_v59, %v276_v40  ;;  %1078 = vmatpush.msra.mxu3 %v712_v54  ;;  %1062 = vmatpush.msra.mxu2 %v692_v55  ;;  %v656_v40 = vld [vmem:[%s2221_s1 + $0x408] sm:$0xff]  ;;  %v673_v46 = vld [vmem:[%s2221_s1 + $0x490] sm:$0xff] }
  0x5d   :  { %v445_v10 = vrot.slane %v444_v1, 1  ;;  %v80_v11 = vadd.f32 %v79_v2, %v78_v52  ;;  %v429_v12 = vrot.slane %v292_v53, 4  ;;  %1041 = vmatpush.msra.mxu1 %v677_v60  ;;  %1023 = vmatpush.msra.mxu0 %v659_v61  ;;  %v95_v16 = vrot.slane %v23_v62, 4  ;;  %v41_v49 = vld [vmem:[%s2220_s0 + $0x150] sm:$0xff]  ;;  %v688_v52 = vld [vmem:[%s2221_s1 + $0x508] sm:$0xff] }
  0x5e   :  { %v824_v17 = vsel %vm819_vm0, %v515_v5, %v499_v44  ;;  %v350_v18 = vadd.f32 %v349_v6, %v348_v57  ;;  %v176_v19 = vadd.f32 %v175_v7, %v174_v58  ;;  %v335_v20 = vrot.slane %v334_v8, 2  ;;  %1079 = vmatpush.msra.mxu3 %v711_v3  ;;  %1063 = vmatpush.msra.mxu2 %v691_v4  ;;  %v707_v57 = vld [vmem:[%s2221_s1 + $0x5a0] sm:$0xff]  ;;  %v672_v58 = vld [vmem:[%s2221_s1 + $0x488] sm:$0xff]  ;;  %v281_v3 = vld [vmem:[%s2220_s0 + $0xd0] sm:$0xff] }
  0x5f   :  { %948 = vmatmul.f32.vlgmr.msrb.gmra.mxu0 %v824_v17  ;;  %v446_v23 = vadd.f32 %v445_v10, %v444_v1  ;;  %v81_v24 = vrot.slane %v80_v11, 1  ;;  %v430_v25 = vadd.f32 %v429_v12, %v292_v53  ;;  %1042 = vmatpush.msra.mxu1 %v676_v9  ;;  %v96_v28 = vadd.f32 %v95_v16, %v23_v62  ;;  %v655_v53 = vld [vmem:[%s2221_s1 + $0x400] sm:$0xff]  ;;  %v734_v4 = vld [vmem:[%s2221_s1 + $0x678] sm:$0xff]  ;;  %v297_v10 = vld [vmem:[%s2220_s0 + $0x1d0] sm:$0xff] }
  0x60   :  { %v502_v30 = vadd.f32 %v350_v18, %v94_v63  ;;  %v177_v31 = vrot.slane %v176_v19, 1  ;;  %v336_v32 = vadd.f32 %v335_v20, %v334_v8  ;;  %1080 = vmatpush.msra.mxu3 %v710_v13  ;;  %1024 = vmatpush.msra.mxu0 %v658_v14  ;;  %v191_v35 = vrot.slane %v39_v15, 4  ;;  %v687_v63 = vld [vmem:[%s2221_s1 + $0x500] sm:$0xff]  ;;  %v706_v6 = vld [vmem:[%s2221_s1 + $0x598] sm:$0xff]  ;;  %v733_v17 = vld [vmem:[%s2221_s1 + $0x670] sm:$0xff] }
  0x61   :  { %v518_v37 = vadd.f32 %v446_v23, %v190_v0  ;;  %v82_v38 = vadd.f32 %v81_v24, %v80_v11  ;;  %v431_v39 = vrot.slane %v430_v25, 2  ;;  %1043 = vmatpush.msra.mxu1 %v675_v21  ;;  %1064 = vmatpush.msra.mxu2 %v690_v22  ;;  %v97_v41 = vrot.slane %v96_v28, 2  ;;  %v766_v11 = vld [vmem:[%s2221_s1 + $0x778] sm:$0xff]  ;;  %v671_v16 = vld [vmem:[%s2221_s1 + $0x480] sm:$0xff]  ;;  %v705_v18 = vld [vmem:[%s2221_s1 + $0x590] sm:$0xff] }
  0x62   :  { %v178_v43 = vadd.f32 %v177_v31, %v176_v19  ;;  %v337_v44 = vrot.slane %v336_v32, 1  ;;  %1081 = vmatpush.msra.mxu3 %v709_v26  ;;  %1025 = vmatpush.msra.mxu0 %v657_v27  ;;  %v192_v47 = vadd.f32 %v191_v35, %v39_v15  ;;  %v351_v48 = vrot.slane %v279_v29, 4  ;;  %v765_v23 = vld [vmem:[%s2221_s1 + $0x770] sm:$0xff]  ;;  %v40_v35 = vld [vmem:[%s2220_s0 + $0x148] sm:$0xff] }
  0x63   :  { %v827_v50 = vsel %vm819_vm0, %v518_v37, %v502_v30  ;;  %v432_v51 = vadd.f32 %v431_v39, %v430_v25  ;;  %1044 = vmatpush.msra.mxu1 %v674_v33  ;;  %1065 = vmatpush.msra.mxu2 %v689_v34  ;;  %v98_v54 = vadd.f32 %v97_v41, %v96_v28  ;;  %v447_v55 = vrot.slane %v295_v36, 4  ;;  %v24_v28 = vld [vmem:[%s2220_s0 + $0x48] sm:$0xff] }
  0x64   :  { %1008 = vmatmul.f32.vlgmr.msrb.gmra.mxu3 %v827_v50  ;;  %v338_v56 = vadd.f32 %v337_v44, %v336_v32  ;;  %1026 = vmatpush.msra.mxu0 %v656_v40  ;;  %v193_v59 = vrot.slane %v192_v47, 2  ;;  %v352_v60 = vadd.f32 %v351_v48, %v279_v29  ;;  %v107_v61 = vrot.slane %v25_v42, 4  ;;  %v732_v29 = vld [vmem:[%s2221_s1 + $0x668] sm:$0xff] }
  0x65   :  { %v433_v62 = vrot.slane %v432_v51, 1  ;;  %1082 = vmatpush.msra.mxu3 %v708_v45  ;;  %1045 = vmatpush.msra.mxu1 %v673_v46  ;;  %v99_v0 = vrot.slane %v98_v54, 1  ;;  %v448_v1 = vadd.f32 %v447_v55, %v295_v36  ;;  %v203_v2 = vrot.slane %v41_v49, 4  ;;  %v704_v30 = vld [vmem:[%s2221_s1 + $0x588] sm:$0xff]  ;;  %v750_v36 = vld [vmem:[%s2221_s1 + $0x6f8] sm:$0xff]  ;;  %v703_v45 = vld [vmem:[%s2221_s1 + $0x580] sm:$0xff] }
  0x66   :  { %v500_v5 = vadd.f32 %v338_v56, %v82_v38  ;;  %1066 = vmatpush.msra.mxu2 %v688_v52  ;;  %1027 = vmatpush.msra.mxu0 %v655_v53  ;;  %v194_v7 = vadd.f32 %v193_v59, %v192_v47  ;;  %v353_v8 = vrot.slane %v352_v60, 2  ;;  %v108_v9 = vadd.f32 %v107_v61, %v25_v42  ;;  %v764_v41 = vld [vmem:[%s2221_s1 + $0x768] sm:$0xff]  ;;  %v782_v53 = vld [vmem:[%s2221_s1 + $0x7f8] sm:$0xff]  ;;  %v763_v61 = vld [vmem:[%s2221_s1 + $0x760] sm:$0xff] }
  0x67   :  { %v434_v12 = vadd.f32 %v433_v62, %v432_v51  ;;  %1083 = vmatpush.msra.mxu3 %v707_v57  ;;  %1046 = vmatpush.msra.mxu1 %v672_v58  ;;  %v100_v13 = vadd.f32 %v99_v0, %v98_v54  ;;  %v449_v14 = vrot.slane %v448_v1, 2  ;;  %v204_v15 = vadd.f32 %v203_v2, %v41_v49  ;;  %v280_v47 = vld [vmem:[%s2220_s0 + $0xc8] sm:$0xff]  ;;  %v749_v54 = vld [vmem:[%s2221_s1 + $0x6f0] sm:$0xff]  ;;  %v26_v59 = vld [vmem:[%s2220_s0 + $0x58] sm:$0xff] }
  0x68   :  { %1067 = vmatpush.msra.mxu2 %v687_v63  ;;  %v195_v19 = vrot.slane %v194_v7, 1  ;;  %v354_v20 = vadd.f32 %v353_v8, %v352_v60  ;;  %v109_v21 = vrot.slane %v108_v9, 2  ;;  %v363_v22 = vrot.slane %v281_v3, 4  ;;  %1092 = vmatpush.msrb.mxu0 %v734_v4  ;;  %v296_v52 = vld [vmem:[%s2220_s0 + $0x1c8] sm:$0xff]  ;;  %v731_v60 = vld [vmem:[%s2221_s1 + $0x660] sm:$0xff]  ;;  %v42_v2 = vld [vmem:[%s2220_s0 + $0x158] sm:$0xff] }
  0x69   :  { %v516_v24 = vadd.f32 %v434_v12, %v178_v43  ;;  %1084 = vmatpush.msra.mxu3 %v706_v6  ;;  %v450_v25 = vadd.f32 %v449_v14, %v448_v1  ;;  %v205_v26 = vrot.slane %v204_v15, 2  ;;  %v459_v27 = vrot.slane %v297_v10, 4  ;;  %1047 = vmatpush.msra.mxu1 %v671_v16  ;;  %v748_v8 = vld [vmem:[%s2221_s1 + $0x6e8] sm:$0xff]  ;;  %v762_v14 = vld [vmem:[%s2221_s1 + $0x758] sm:$0xff] }
  0x6a   :  { %1132 = vmatpush.msrb.mxu2 %v766_v11  ;;  %v196_v31 = vadd.f32 %v195_v19, %v194_v7  ;;  %v355_v32 = vrot.slane %v354_v20, 1  ;;  %v110_v33 = vadd.f32 %v109_v21, %v108_v9  ;;  %v364_v34 = vadd.f32 %v363_v22, %v281_v3  ;;  %1093 = vmatpush.msrb.mxu0 %v733_v17  ;;  %v781_v7 = vld [vmem:[%s2221_s1 + $0x7f0] sm:$0xff]  ;;  %v780_v19 = vld [vmem:[%s2221_s1 + $0x7e8] sm:$0xff] }
  0x6b   :  { %v825_v37 = vsel %vm819_vm0, %v516_v24, %v500_v5  ;;  %1085 = vmatpush.msra.mxu3 %v705_v18  ;;  %v451_v38 = vrot.slane %v450_v25, 1  ;;  %v206_v39 = vadd.f32 %v205_v26, %v204_v15  ;;  %v460_v40 = vadd.f32 %v459_v27, %v297_v10  ;;  %v729_v26 = vld [vmem:[%s2221_s1 + $0x650] sm:$0xff] }
  0x6c   :  { %1133 = vmatpush.msrb.mxu2 %v765_v23  ;;  %968 = vmatmul.f32.vlgmr.msrb.gmra.mxu1 %v825_v37  ;;  %v356_v42 = vadd.f32 %v355_v32, %v354_v20  ;;  %v111_v43 = vrot.slane %v110_v33, 1  ;;  %v365_v44 = vrot.slane %v364_v34, 2  ;;  %v101_v46 = vrot.slane %v24_v28, 4  ;;  %v747_v20 = vld [vmem:[%s2221_s1 + $0x6e0] sm:$0xff]  ;;  %v761_v27 = vld [vmem:[%s2221_s1 + $0x750] sm:$0xff] }
  0x6d   :  { %1094 = vmatpush.msrb.mxu0 %v732_v29  ;;  %1086 = vmatpush.msra.mxu3 %v704_v30  ;;  %v452_v48 = vadd.f32 %v451_v38, %v450_v25  ;;  %v207_v49 = vrot.slane %v206_v39, 1  ;;  %v461_v50 = vrot.slane %v460_v40, 2  ;;  %v197_v51 = vrot.slane %v40_v35, 4  ;;  %v282_v25 = vld [vmem:[%s2220_s0 + $0xd8] sm:$0xff]  ;;  %v779_v32 = vld [vmem:[%s2221_s1 + $0x7e0] sm:$0xff] }
  0x6e   :  { %1112 = vmatpush.msrb.mxu1 %v750_v36  ;;  %v503_v55 = vadd.f32 %v356_v42, %v100_v13  ;;  %v112_v56 = vadd.f32 %v111_v43, %v110_v33  ;;  %v366_v57 = vadd.f32 %v365_v44, %v364_v34  ;;  %v102_v58 = vadd.f32 %v101_v46, %v24_v28  ;;  %v730_v13 = vld [vmem:[%s2221_s1 + $0x658] sm:$0xff] }
  0x6f   :  { %1134 = vmatpush.msrb.mxu2 %v764_v41  ;;  %v519_v62 = vadd.f32 %v452_v48, %v196_v31  ;;  %v208_v63 = vadd.f32 %v207_v49, %v206_v39  ;;  %v462_v0 = vadd.f32 %v461_v50, %v460_v40  ;;  %1087 = vmatpush.msra.mxu3 %v703_v45  ;;  %v357_v5 = vrot.slane %v280_v47, 4  ;;  %v746_v33 = vld [vmem:[%s2221_s1 + $0x6d8] sm:$0xff]  ;;  %v728_v39 = vld [vmem:[%s2221_s1 + $0x648] sm:$0xff]  ;;  %v745_v45 = vld [vmem:[%s2221_s1 + $0x6d0] sm:$0xff] }
  0x70   :  { %v198_v1 = vadd.f32 %v197_v51, %v40_v35  ;;  %v367_v3 = vrot.slane %v366_v57, 1  ;;  %v103_v4 = vrot.slane %v102_v58, 2  ;;  %v453_v6 = vrot.slane %v296_v52, 4  ;;  %1113 = vmatpush.msrb.mxu1 %v749_v54  ;;  %1095 = vmatpush.msrb.mxu0 %v731_v60  ;;  %v298_v38 = vld [vmem:[%s2220_s0 + $0x1d8] sm:$0xff]  ;;  %v760_v50 = vld [vmem:[%s2221_s1 + $0x748] sm:$0xff]  ;;  %v727_v51 = vld [vmem:[%s2221_s1 + $0x640] sm:$0xff] }
  0x71   :  { %1152 = vmatpush.msrb.mxu3 %v782_v53  ;;  %v828_v9 = vsel %vm819_vm0, %v519_v62, %v503_v55  ;;  %v463_v10 = vrot.slane %v462_v0, 1  ;;  %v113_v12 = vrot.slane %v26_v59, 4  ;;  %1135 = vmatpush.msrb.mxu2 %v763_v61  ;;  %v358_v17 = vadd.f32 %v357_v5, %v280_v47  ;;  %v778_v44 = vld [vmem:[%s2221_s1 + $0x7d8] sm:$0xff]  ;;  %v776_v61 = vld [vmem:[%s2221_s1 + $0x7c8] sm:$0xff]  ;;  %v27_v5 = vld [vmem:[%s2220_s0 + $0x60] sm:$0xff] }
  0x72   :  { %v199_v11 = vrot.slane %v198_v1, 2  ;;  %1028 = vmatmul.f32.vlgmr.msra.gmra.mxu0 %v828_v9  ;;  %v368_v15 = vadd.f32 %v367_v3, %v366_v57  ;;  %v104_v16 = vadd.f32 %v103_v4, %v102_v58  ;;  %v454_v18 = vadd.f32 %v453_v6, %v296_v52  ;;  %1114 = vmatpush.msrb.mxu1 %v748_v8  ;;  %v744_v57 = vld [vmem:[%s2221_s1 + $0x6c8] sm:$0xff]  ;;  %v759_v58 = vld [vmem:[%s2221_s1 + $0x740] sm:$0xff]  ;;  %v726_v62 = vld [vmem:[%s2221_s1 + $0x638] sm:$0xff] }
  0x73   :  { %v464_v21 = vadd.f32 %v463_v10, %v462_v0  ;;  %v114_v23 = vadd.f32 %v113_v12, %v26_v59  ;;  %v209_v24 = vrot.slane %v42_v2, 4  ;;  %1153 = vmatpush.msrb.mxu3 %v781_v7  ;;  %v359_v30 = vrot.slane %v358_v17, 2  ;;  %1096 = vmatpush.msrb.mxu0 %v730_v13  ;;  %v758_v4 = vld [vmem:[%s2221_s1 + $0x738] sm:$0xff]  ;;  %v43_v6 = vld [vmem:[%s2220_s0 + $0x160] sm:$0xff]  ;;  %v725_v9 = vld [vmem:[%s2221_s1 + $0x630] sm:$0xff] }
  0x74   :  { %v200_v22 = vadd.f32 %v199_v11, %v198_v1  ;;  %v505_v28 = vadd.f32 %v368_v15, %v112_v56  ;;  %v105_v29 = vrot.slane %v104_v16, 1  ;;  %v455_v31 = vrot.slane %v454_v18, 2  ;;  %1136 = vmatpush.msrb.mxu2 %v762_v14  ;;  %1115 = vmatpush.msrb.mxu1 %v747_v20  ;;  %v777_v56 = vld [vmem:[%s2221_s1 + $0x7d0] sm:$0xff]  ;;  %v283_v12 = vld [vmem:[%s2220_s0 + $0xe0] sm:$0xff] }
  0x75   :  { %v521_v34 = vadd.f32 %v464_v21, %v208_v63  ;;  %v115_v36 = vrot.slane %v114_v23, 2  ;;  %v210_v37 = vadd.f32 %v209_v24, %v42_v2  ;;  %1154 = vmatpush.msrb.mxu3 %v780_v19  ;;  %v360_v41 = vadd.f32 %v359_v30, %v358_v17  ;;  %1097 = vmatpush.msrb.mxu0 %v729_v26  ;;  %v743_v63 = vld [vmem:[%s2221_s1 + $0x6c0] sm:$0xff]  ;;  %v29_v19 = vld [vmem:[%s2220_s0 + $0x70] sm:$0xff]  ;;  %v742_v21 = vld [vmem:[%s2221_s1 + $0x6b8] sm:$0xff] }
  0x76   :  { %v201_v35 = vrot.slane %v200_v22, 1  ;;  %v106_v40 = vadd.f32 %v105_v29, %v104_v16  ;;  %v456_v42 = vadd.f32 %v455_v31, %v454_v18  ;;  %v369_v43 = vrot.slane %v282_v25, 4  ;;  %1137 = vmatpush.msrb.mxu2 %v761_v27  ;;  %1116 = vmatpush.msrb.mxu1 %v746_v33  ;;  %v299_v13 = vld [vmem:[%s2220_s0 + $0x1e0] sm:$0xff]  ;;  %v45_v26 = vld [vmem:[%s2220_s0 + $0x170] sm:$0xff]  ;;  %v774_v30 = vld [vmem:[%s2221_s1 + $0x7b8] sm:$0xff] }
  0x77   :  { %v830_v46 = vsel %vm819_vm0, %v521_v34, %v505_v28  ;;  %v116_v48 = vadd.f32 %v115_v36, %v114_v23  ;;  %v211_v49 = vrot.slane %v210_v37, 2  ;;  %1155 = vmatpush.msrb.mxu3 %v779_v32  ;;  %v361_v52 = vrot.slane %v360_v41, 1  ;;  %1098 = vmatpush.msrb.mxu0 %v728_v39  ;;  %v775_v18 = vld [vmem:[%s2221_s1 + $0x7c0] sm:$0xff]  ;;  %v724_v31 = vld [vmem:[%s2221_s1 + $0x628] sm:$0xff]  ;;  %v741_v33 = vld [vmem:[%s2221_s1 + $0x6b0] sm:$0xff] }
  0x78   :  { %v202_v47 = vadd.f32 %v201_v35, %v200_v22  ;;  %1068 = vmatmul.f32.vlgmr.msra.gmra.mxu2 %v830_v46  ;;  %v457_v53 = vrot.slane %v456_v42, 1  ;;  %v370_v54 = vadd.f32 %v369_v43, %v282_v25  ;;  %v465_v55 = vrot.slane %v298_v38, 4  ;;  %1117 = vmatpush.msrb.mxu1 %v745_v45  ;;  %v757_v22 = vld [vmem:[%s2221_s1 + $0x730] sm:$0xff]  ;;  %v756_v34 = vld [vmem:[%s2221_s1 + $0x728] sm:$0xff]  ;;  %v755_v46 = vld [vmem:[%s2221_s1 + $0x720] sm:$0xff] }
  0x79   :  { %v117_v59 = vrot.slane %v116_v48, 1  ;;  %v212_v60 = vadd.f32 %v211_v49, %v210_v37  ;;  %1156 = vmatpush.msrb.mxu3 %v778_v44  ;;  %v362_v0 = vadd.f32 %v361_v52, %v360_v41  ;;  %1138 = vmatpush.msrb.mxu2 %v760_v50  ;;  %v119_v10 = vrot.slane %v27_v5, 4  ;;  %v773_v41 = vld [vmem:[%s2221_s1 + $0x7b0] sm:$0xff]  ;;  %v740_v45 = vld [vmem:[%s2221_s1 + $0x6a8] sm:$0xff] }
  0x7a   :  { %v458_v1 = vadd.f32 %v457_v53, %v456_v42  ;;  %v371_v2 = vrot.slane %v370_v54, 2  ;;  %v466_v3 = vadd.f32 %v465_v55, %v298_v38  ;;  %1099 = vmatpush.msrb.mxu0 %v727_v51  ;;  %1118 = vmatpush.msrb.mxu1 %v744_v57  ;;  %v215_v11 = vrot.slane %v43_v6, 4  ;;  %v723_v42 = vld [vmem:[%s2221_s1 + $0x620] sm:$0xff]  ;;  %v285_v51 = vld [vmem:[%s2220_s0 + $0xf0] sm:$0xff]  ;;  %v722_v55 = vld [vmem:[%s2221_s1 + $0x618] sm:$0xff] }
  0x7b   :  { %v118_v7 = vadd.f32 %v117_v59, %v116_v48  ;;  %v213_v8 = vrot.slane %v212_v60, 1  ;;  %1157 = vmatpush.msrb.mxu3 %v777_v56  ;;  %v504_v14 = vadd.f32 %v362_v0, %v106_v40  ;;  %1139 = vmatpush.msrb.mxu2 %v759_v58  ;;  %v120_v23 = vadd.f32 %v119_v10, %v27_v5  ;;  %v739_v58 = vld [vmem:[%s2221_s1 + $0x6a0] sm:$0xff]  ;;  %v754_v59 = vld [vmem:[%s2221_s1 + $0x718] sm:$0xff] }
  0x7c   :  { %v520_v15 = vadd.f32 %v458_v1, %v202_v47  ;;  %v372_v16 = vadd.f32 %v371_v2, %v370_v54  ;;  %v467_v17 = vrot.slane %v466_v3, 2  ;;  %1100 = vmatpush.msrb.mxu0 %v726_v62  ;;  %1119 = vmatpush.msrb.mxu1 %v743_v63  ;;  %v216_v24 = vadd.f32 %v215_v11, %v43_v6  ;;  %v772_v54 = vld [vmem:[%s2221_s1 + $0x7a8] sm:$0xff]  ;;  %v721_v1 = vld [vmem:[%s2221_s1 + $0x610] sm:$0xff] }
  0x7d   :  { %v214_v20 = vadd.f32 %v213_v8, %v212_v60  ;;  %1158 = vmatpush.msrb.mxu3 %v776_v61  ;;  %v375_v25 = vrot.slane %v283_v12, 4  ;;  %1140 = vmatpush.msrb.mxu2 %v758_v4  ;;  %v471_v32 = vrot.slane %v299_v13, 4  ;;  %v121_v35 = vrot.slane %v120_v23, 2  ;;  %v301_v4 = vld [vmem:[%s2220_s0 + $0x1f0] sm:$0xff]  ;;  %v28_v6 = vld [vmem:[%s2220_s0 + $0x68] sm:$0xff]  ;;  %v738_v8 = vld [vmem:[%s2221_s1 + $0x698] sm:$0xff] }
  0x7e   :  { %v829_v27 = vsel %vm819_vm0, %v520_v15, %v504_v14  ;;  %v373_v28 = vrot.slane %v372_v16, 1  ;;  %v468_v29 = vadd.f32 %v467_v17, %v466_v3  ;;  %1101 = vmatpush.msrb.mxu0 %v725_v9  ;;  %v217_v36 = vrot.slane %v216_v24, 2  ;;  %1120 = vmatpush.msrb.mxu1 %v742_v21  ;;  %v753_v15 = vld [vmem:[%s2221_s1 + $0x710] sm:$0xff]  ;;  %v770_v21 = vld [vmem:[%s2221_s1 + $0x798] sm:$0xff] }
  0x7f   :  { %1048 = vmatmul.f32.vlgmr.msra.gmra.mxu1 %v829_v27  ;;  %1159 = vmatpush.msrb.mxu3 %v775_v18  ;;  %v376_v37 = vadd.f32 %v375_v25, %v283_v12  ;;  %v131_v38 = vrot.slane %v29_v19, 4  ;;  %v472_v43 = vadd.f32 %v471_v32, %v299_v13  ;;  %v227_v44 = vrot.slane %v45_v26, 4  ;;  %v44_v13 = vld [vmem:[%s2220_s0 + $0x168] sm:$0xff] }
  0x80   :  { %v374_v39 = vadd.f32 %v373_v28, %v372_v16  ;;  %v469_v40 = vrot.slane %v468_v29, 1  ;;  %1141 = vmatpush.msrb.mxu2 %v757_v22  ;;  %1102 = vmatpush.msrb.mxu0 %v724_v31  ;;  %v122_v47 = vadd.f32 %v121_v35, %v120_v23  ;;  %v218_v48 = vadd.f32 %v217_v36, %v216_v24  ;;  %v720_v16 = vld [vmem:[%s2221_s1 + $0x608] sm:$0xff]  ;;  %v737_v22 = vld [vmem:[%s2221_s1 + $0x690] sm:$0xff] }
  0x81   :  { %1160 = vmatpush.msrb.mxu3 %v774_v30  ;;  %v377_v49 = vrot.slane %v376_v37, 2  ;;  %v132_v50 = vadd.f32 %v131_v38, %v29_v19  ;;  %1121 = vmatpush.msrb.mxu1 %v741_v33  ;;  %v473_v56 = vrot.slane %v472_v43, 2  ;;  %v228_v57 = vadd.f32 %v227_v44, %v45_v26  ;;  %v300_v27 = vld [vmem:[%s2220_s0 + $0x1e8] sm:$0xff] }
  0x82   :  { %v470_v52 = vadd.f32 %v469_v40, %v468_v29  ;;  %v506_v53 = vadd.f32 %v374_v39, %v118_v7  ;;  %1142 = vmatpush.msrb.mxu2 %v756_v34  ;;  %1103 = vmatpush.msrb.mxu0 %v723_v42  ;;  %v123_v60 = vrot.slane %v122_v47, 1  ;;  %v219_v61 = vrot.slane %v218_v48, 1  ;;  %v771_v7 = vld [vmem:[%s2221_s1 + $0x7a0] sm:$0xff]  ;;  %v752_v28 = vld [vmem:[%s2221_s1 + $0x708] sm:$0xff]  ;;  %v769_v34 = vld [vmem:[%s2221_s1 + $0x790] sm:$0xff] }
  0x83   :  { %1161 = vmatpush.msrb.mxu3 %v773_v41  ;;  %v378_v62 = vadd.f32 %v377_v49, %v376_v37  ;;  %v133_v63 = vrot.slane %v132_v50, 2  ;;  %1122 = vmatpush.msrb.mxu1 %v740_v45  ;;  %v474_v2 = vadd.f32 %v473_v56, %v472_v43  ;;  %v229_v3 = vrot.slane %v228_v57, 2  ;;  %v719_v29 = vld [vmem:[%s2221_s1 + $0x600] sm:$0xff]  ;;  %v736_v35 = vld [vmem:[%s2221_s1 + $0x688] sm:$0xff]  ;;  %v30_v40 = vld [vmem:[%s2220_s0 + $0x78] sm:$0xff] }
  0x84   :  { %v522_v0 = vadd.f32 %v470_v52, %v214_v20  ;;  %1143 = vmatpush.msrb.mxu2 %v755_v46  ;;  %v387_v5 = vrot.slane %v285_v51, 4  ;;  %1104 = vmatpush.msrb.mxu0 %v722_v55  ;;  %v124_v9 = vadd.f32 %v123_v60, %v122_v47  ;;  %v220_v10 = vadd.f32 %v219_v61, %v218_v48  ;;  %v284_v20 = vld [vmem:[%s2220_s0 + $0xe8] sm:$0xff]  ;;  %v751_v41 = vld [vmem:[%s2221_s1 + $0x700] sm:$0xff]  ;;  %v46_v52 = vld [vmem:[%s2220_s0 + $0x178] sm:$0xff] }
  0x85   :  { %1162 = vmatpush.msrb.mxu3 %v772_v54  ;;  %v379_v11 = vrot.slane %v378_v62, 1  ;;  %v134_v12 = vadd.f32 %v133_v63, %v132_v50  ;;  %1123 = vmatpush.msrb.mxu1 %v739_v58  ;;  %v475_v17 = vrot.slane %v474_v2, 1  ;;  %v230_v18 = vadd.f32 %v229_v3, %v228_v57  ;;  %v768_v46 = vld [vmem:[%s2221_s1 + $0x788] sm:$0xff]  ;;  %v735_v48 = vld [vmem:[%s2221_s1 + $0x680] sm:$0xff] }
  0x86   :  { %v831_v14 = vsel %vm819_vm0, %v522_v0, %v506_v53  ;;  %1144 = vmatpush.msrb.mxu2 %v754_v59  ;;  %v388_v19 = vadd.f32 %v387_v5, %v285_v51  ;;  %1105 = vmatpush.msrb.mxu0 %v721_v1  ;;  %v483_v25 = vrot.slane %v301_v4, 4  ;;  %v125_v26 = vrot.slane %v28_v6, 4  ;;  %v767_v58 = vld [vmem:[%s2221_s1 + $0x780] sm:$0xff] }
  0x87   :  { %1088 = vmatmul.f32.vlgmr.msra.gmra.mxu3 %v831_v14  ;;  %v380_v23 = vadd.f32 %v379_v11, %v378_v62  ;;  %v135_v24 = vrot.slane %v134_v12, 1  ;;  %1124 = vmatpush.msrb.mxu1 %v738_v8  ;;  %v476_v30 = vadd.f32 %v475_v17, %v474_v2  ;;  %v231_v31 = vrot.slane %v230_v18, 1 }
  0x88   :  { %1163 = vmatpush.msrb.mxu3 %v771_v7  ;;  %v389_v32 = vrot.slane %v388_v19, 2  ;;  %v221_v33 = vrot.slane %v44_v13, 4  ;;  %1145 = vmatpush.msrb.mxu2 %v753_v15  ;;  %v484_v38 = vadd.f32 %v483_v25, %v301_v4  ;;  %v381_v39 = vrot.slane %v284_v20, 4 }
  0x89   :  { %1106 = vmatpush.msrb.mxu0 %v720_v16  ;;  %v507_v36 = vadd.f32 %v380_v23, %v124_v9  ;;  %v136_v37 = vadd.f32 %v135_v24, %v134_v12  ;;  %1125 = vmatpush.msrb.mxu1 %v737_v22  ;;  %v523_v42 = vadd.f32 %v476_v30, %v220_v10  ;;  %v477_v45 = vrot.slane %v300_v27, 4 }
  0x8a   :  { %1164 = vmatpush.msrb.mxu3 %v770_v21  ;;  %v232_v43 = vadd.f32 %v231_v31, %v230_v18  ;;  %v390_v44 = vadd.f32 %v389_v32, %v388_v19  ;;  %1146 = vmatpush.msrb.mxu2 %v752_v28  ;;  %v485_v47 = vrot.slane %v484_v38, 2  ;;  %v126_v49 = vadd.f32 %v125_v26, %v28_v6  ;;  %v286_v6 = vld [vmem:[%s2220_s0 + $0xf8] sm:$0xff] }
  0x8b   :  { %1107 = vmatpush.msrb.mxu0 %v719_v29  ;;  %v222_v50 = vadd.f32 %v221_v33, %v44_v13  ;;  %v382_v51 = vadd.f32 %v381_v39, %v284_v20  ;;  %1126 = vmatpush.msrb.mxu1 %v736_v35  ;;  %v832_v53 = vsel %vm819_vm0, %v523_v42, %v507_v36  ;;  %v137_v56 = vrot.slane %v30_v40, 4  ;;  %v302_v18 = vld [vmem:[%s2220_s0 + $0x1f8] sm:$0xff] }
  0x8c   :  { %1165 = vmatpush.msrb.mxu3 %v769_v34  ;;  %v391_v54 = vrot.slane %v390_v44, 1  ;;  %v478_v55 = vadd.f32 %v477_v45, %v300_v27  ;;  %1147 = vmatpush.msrb.mxu2 %v751_v41  ;;  %v486_v57 = vadd.f32 %v485_v47, %v484_v38  ;;  %v127_v59 = vrot.slane %v126_v49, 2 }
  0x8d   :  { %1108 = vmatmul.f32.vlgmr.msrb.gmra.mxu0 %v832_v53  ;;  %v223_v60 = vrot.slane %v222_v50, 2  ;;  %v383_v61 = vrot.slane %v382_v51, 2  ;;  %1127 = vmatpush.msrb.mxu1 %v735_v48  ;;  %v138_v0 = vadd.f32 %v137_v56, %v30_v40  ;;  %v233_v1 = vrot.slane %v46_v52, 4  ;;  %v1190_v48 = vld [vmem:[%s2222_s2] ss:$0 sm:$0xff]  ;;  %s1217_s2 = smov [#allocation2]  }
  0x8e   :  { %1166 = vmatpush.msrb.mxu3 %v768_v46  ;;  %v392_v62 = vadd.f32 %v391_v54, %v390_v44  ;;  %v479_v63 = vrot.slane %v478_v55, 2  ;;  %v487_v2 = vrot.slane %v486_v57, 1  ;;  %v128_v3 = vadd.f32 %v127_v59, %v126_v49  ;;  %s1178_s4 = sshll.u32 %s1217_s2, 4  ;;  %s1179_s4 = int_to_ptr.vmem [resolvable:$true] %s1178_s4 }
  0x8f   :  { %v224_v4 = vadd.f32 %v223_v60, %v222_v50  ;;  %v384_v5 = vadd.f32 %v383_v61, %v382_v51  ;;  %v139_v9 = vrot.slane %v138_v0, 2  ;;  %v234_v10 = vadd.f32 %v233_v1, %v46_v52 }
  0x90   :  { %v509_v7 = vadd.f32 %v392_v62, %v136_v37  ;;  %1167 = vmatpush.msrb.mxu3 %v767_v58  ;;  %v480_v8 = vadd.f32 %v479_v63, %v478_v55  ;;  %v488_v11 = vadd.f32 %v487_v2, %v486_v57  ;;  %v129_v12 = vrot.slane %v128_v3, 1 }
  0x91   :  { %v225_v13 = vrot.slane %v224_v4, 1  ;;  %v385_v14 = vrot.slane %v384_v5, 1  ;;  %v140_v16 = vadd.f32 %v139_v9, %v138_v0  ;;  %v235_v17 = vrot.slane %v234_v10, 2 }
  0x92   :  { %v481_v15 = vrot.slane %v480_v8, 1  ;;  %v393_v19 = vrot.slane %v286_v6, 4  ;;  %v525_v20 = vadd.f32 %v488_v11, %v232_v43  ;;  %v130_v21 = vadd.f32 %v129_v12, %v128_v3 }
  0x93   :  { %v226_v22 = vadd.f32 %v225_v13, %v224_v4  ;;  %v386_v23 = vadd.f32 %v385_v14, %v384_v5  ;;  %v236_v28 = vadd.f32 %v235_v17, %v234_v10  ;;  %v489_v29 = vrot.slane %v302_v18, 4 }
  0x94   :  { %v482_v24 = vadd.f32 %v481_v15, %v480_v8  ;;  %v394_v25 = vadd.f32 %v393_v19, %v286_v6  ;;  %v834_v26 = vsel %vm819_vm0, %v525_v20, %v509_v7  ;;  %v141_v32 = vrot.slane %v140_v16, 1 }
  0x95   :  { %v508_v27 = vadd.f32 %v386_v23, %v130_v21  ;;  %1148 = vmatmul.f32.vlgmr.msrb.gmra.mxu2 %v834_v26  ;;  %v490_v33 = vadd.f32 %v489_v29, %v302_v18  ;;  %v237_v36 = vrot.slane %v236_v28, 1 }
  0x96   :  { %v524_v30 = vadd.f32 %v482_v24, %v226_v22  ;;  %v395_v31 = vrot.slane %v394_v25, 2  ;;  %v142_v39 = vadd.f32 %v141_v32, %v140_v16 }
  0x97   :  { %v491_v37 = vrot.slane %v490_v33, 2  ;;  %v238_v42 = vadd.f32 %v237_v36, %v236_v28 }
  0x98   :  { %v833_v34 = vsel %vm819_vm0, %v524_v30, %v508_v27  ;;  %v396_v35 = vadd.f32 %v395_v31, %v394_v25 }
  0x99   :  { %1128 = vmatmul.f32.vlgmr.msrb.gmra.mxu1 %v833_v34  ;;  %v492_v40 = vadd.f32 %v491_v37, %v490_v33 }
  0x9a   :  { %v397_v38 = vrot.slane %v396_v35, 1 }
  0x9b   :  { %v493_v43 = vrot.slane %v492_v40, 1 }
  0x9c   :  { %v398_v41 = vadd.f32 %v397_v38, %v396_v35 }
  0x9d   :  { %v494_v44 = vadd.f32 %v493_v43, %v492_v40 }
  0x9e   :  { %v510_v45 = vadd.f32 %v398_v41, %v142_v39 }
  0x9f   :  { %v526_v46 = vadd.f32 %v494_v44, %v238_v42 }
  0xa1   :  { %v835_v47 = vsel %vm819_vm0, %v526_v46, %v510_v45 }
  0xa2   :  { %1168 = vmatmul.f32.vlgmr.msrb.gmra.mxu3 %v835_v47 }
  0xbf   :  { %v869_v49 = vpop.f32.mrf.mxu0 }
  0xc0   :  { %v870_v50 = vadd.f32 %v1190_v48, %v869_v49 }
  0xc5   :  { %v909_v53 = vpop.f32.mrf.mxu2 }
  0xc7   :  { %v889_v51 = vpop.f32.mrf.mxu1 }
  0xc8   :  { %v890_v52 = vadd.f32 %v889_v51, %v870_v50 }
  0xca   :  { %v910_v54 = vadd.f32 %v909_v53, %v890_v52 }
  0xd2   :  { %v929_v55 = vpop.f32.mrf.mxu3 }
  0xd3   :  { %v930_v56 = vadd.f32 %v929_v55, %v910_v54 }
  0xda   :  { %v989_v61 = vpop.f32.mrf.mxu2 }
  0xdc   :  { %v949_v57 = vpop.f32.mrf.mxu0 }
  0xdd   :  { %v950_v58 = vadd.f32 %v949_v57, %v930_v56 }
  0xe7   :  { %v1009_v63 = vpop.f32.mrf.mxu3 }
  0xe9   :  { %v969_v59 = vpop.f32.mrf.mxu1 }
  0xea   :  { %v970_v60 = vadd.f32 %v969_v59, %v950_v58 }
  0xec   :  { %v990_v62 = vadd.f32 %v989_v61, %v970_v60 }
  0xee   :  { %v1010_v1 = vadd.f32 %v1009_v63, %v990_v62 }
  0xef   :  { %v1029_v0 = vpop.f32.mrf.mxu0 }
  0xf0   :  { %v1030_v2 = vadd.f32 %v1029_v0, %v1010_v1 }
  0xfb   :  { %v1069_v4 = vpop.f32.mrf.mxu2 }
  0xfc   :  { %v1049_v3 = vpop.f32.mrf.mxu1 }
  0xfd   :  { %v1050_v5 = vadd.f32 %v1049_v3, %v1030_v2 }
  0xff   :  { %v1070_v6 = vadd.f32 %v1069_v4, %v1050_v5 }
 0x10a   :  { %v1089_v7 = vpop.f32.mrf.mxu3  ;;  %v1109_v8 = vpop.f32.mrf.mxu0 }
 0x10b   :  { %v1090_v9 = vadd.f32 %v1089_v7, %v1070_v6 }
 0x10d   :  { %v1110_v10 = vadd.f32 %v1109_v8, %v1090_v9 }
 0x116   :  { %v1129_v11 = vpop.f32.mrf.mxu1 }
 0x117   :  { %v1130_v13 = vadd.f32 %v1129_v11, %v1110_v10 }
 0x118   :  { %v1149_v12 = vpop.f32.mrf.mxu2 }
 0x119   :  { %v1150_v14 = vadd.f32 %v1149_v12, %v1130_v13 }
 0x125   :  { %v1169_v15 = vpop.f32.mrf.mxu3 }
 0x126   :  { %v1170_v16 = vadd.f32 %v1169_v15, %v1150_v14 }
 0x128   :  { %1172 = vst [vmem:[#allocation2] sm:$0x3] %v1170_v16 }
 0x129   :  { %1183 = dma.vmem_to_hbm [thread:$0]  %s1179_s4, 32, %s1181_s7, [#allocation3]  }
 0x12a   :  { %1215 = dma.done.wait [#allocation3], 32  }
 0x12b   :  { %1216 = vsyncadd [#allocation3], 4294967264 }
 0x12c   :  { %1188 = vsyncpa [#allocation3], 1 }

</bundles_post_ra>
